<compile_context>
chip_gen: v5e
topology: v5e:2x2
jax: 0.10.0
libtpu: 0.0.40
codegen_flags: <defaults>
</compile_context>

<pallas_src>
import functools

import jax
import jax.numpy as jnp
import numpy as np
from jax import lax
from jax.experimental import pallas as pl
from jax.experimental.pallas import tpu as pltpu


# ----------------------------------------------------------------------------
# Host-side constant builders (tiny; VMEM-resident across grid steps)
# ----------------------------------------------------------------------------
def _x_boundary_masks(h, w):
    """(2, h*w) f32 masks. Row 0: dx=-1 taps (x==0 invalid). Row 1: dx=+1."""
    x = np.arange(h * w, dtype=np.int64) % w
    left = (x >= 1).astype(np.float32)
    right = (x <= w - 2).astype(np.float32)
    return np.stack([left, right], axis=0)


def _decimation_matrix(h, w):
    """(h*w, (h//2)*(w//2)) 0/1 matrix: 2x2 subsample as a single MXU matmul."""
    oh, ow = h // 2, w // 2
    d = np.zeros((h * w, oh * ow), np.float32)
    for yo in range(oh):
        for xo in range(ow):
            d[(2 * yo) * w + (2 * xo), yo * ow + xo] = 1.0
    return d


# ----------------------------------------------------------------------------
# In-kernel 3x3 conv, stride 1, padding 1, on channels-major activations
# ----------------------------------------------------------------------------
def _conv3x3(pad_ref, act, w_ref, b_ref, xmask, h, w):
    """act: (Cin, h*w) f32; w_ref: (9, Cout, Cin) with tap t=(dy+1)*3+(dx+1);
    b_ref: (Cout, 1); xmask: (2, h*w); pad_ref: (Cin, h*w + 2*(w+1)) scratch.

    The activation is written once into the lane-padded scratch; each tap view
    is a statically shifted window read (zero-filled at the dy borders), with a
    tiny mask multiply only for the dx=+/-1 taps (row-wrap lanes).
    """
    cin = act.shape[0]
    cout = w_ref.shape[1]
    s = h * w
    ctr = w + 1                                    # pad width on each side

    # Zero the pads every call (scratch is not zero-initialized, and with a
    # "parallel" grid axis we cannot rely on program_id==0 running per core).
    pad_ref[:, :ctr] = jnp.zeros((cin, ctr), jnp.float32)
    pad_ref[:, ctr + s:] = jnp.zeros((cin, ctr), jnp.float32)
    pad_ref[:, ctr:ctr + s] = act

    acc = jnp.zeros((cout, s), dtype=jnp.float32)
    for t in range(9):
        dy, dx = t // 3 - 1, t % 3 - 1
        off = dy * w + dx
        view = pad_ref[:, pl.ds(ctr + off, s)]     # static offset window
        if dx == -1:
            view = view * xmask[0:1, :]
        elif dx == 1:
            view = view * xmask[1:2, :]
        acc = acc + jnp.dot(w_ref[t], view, preferred_element_type=jnp.float32)
    return acc + b_ref[...]


# ----------------------------------------------------------------------------
# Fused forward kernel (one grid step == one sample)
# ----------------------------------------------------------------------------
def _net_kernel(x_ref, sw_ref, sb_ref, dw_ref, db_ref, rw_ref, rb_ref,
                fcw_ref, fcb_ref, m16_ref, m8_ref, dec_ref,
                pred_ref, feats_ref, pad_x, pad_h, pad_d, *, h, w):
    oh, ow = h // 2, w // 2
    m_full = m16_ref[...]                          # (2, h*w)
    m_half = m8_ref[...]                           # (2, oh*ow)

    x = x_ref[0]                                   # (Cin, h*w), NCHW-native

    # stem: 3x3 s1 p1 + ReLU
    hact = jnp.maximum(_conv3x3(pad_x, x, sw_ref, sb_ref, m_full, h, w), 0.0)

    # trunk downsample: 3x3 s2 p1 + ReLU == stride-1 conv then one decimation
    # matmul (bias commutes through the 0/1 decimation columns).
    ds_full = _conv3x3(pad_h, hact, dw_ref, db_ref, m_full, h, w)
    ds = jnp.maximum(jnp.dot(ds_full, dec_ref[...],
                             preferred_element_type=jnp.float32), 0.0)

    # trunk residual conv with fused residual add + ReLU
    res = _conv3x3(pad_d, ds, rw_ref, rb_ref, m_half, oh, ow)
    trunk = jnp.maximum(res + ds, 0.0)

    # 'trunk_output' (feats) -- already (C, H*W) == flattened NCHW.
    feats_ref[0] = trunk.astype(feats_ref.dtype)

    # head: GAP as a cross-lane sum (XLU slot), then fc + tanh ('pred').
    pooled = jnp.sum(trunk, axis=-1, keepdims=True) * (1.0 / (oh * ow))
    logits = jnp.dot(fcw_ref[...], pooled,
                     preferred_element_type=jnp.float32) + fcb_ref[...]
    pred_ref[0] = jnp.tanh(logits).astype(pred_ref.dtype)


# ----------------------------------------------------------------------------
# Public wrapper: NCHW in, (pred, feats NCHW) out, single pallas_call
# ----------------------------------------------------------------------------
def net_forward(x_nchw, params):
    n, cin, h, w = x_nchw.shape
    c1 = params["stem_w"].shape[1]
    c2 = params["ds_w"].shape[1]
    nc = params["fc_wt"].shape[0]
    oh, ow = h // 2, w // 2
    hw, ohw = h * w, oh * ow

    x2 = x_nchw.reshape(n, cin, hw)      # metadata-only reshape (NCHW-native)

    m_full = jnp.asarray(_x_boundary_masks(h, w))
    m_half = jnp.asarray(_x_boundary_masks(oh, ow))
    dec = jnp.asarray(_decimation_matrix(h, w))

    const2 = lambda i: (0, 0)

    grid_spec = pltpu.PrefetchScalarGridSpec(
        num_scalar_prefetch=0,
        grid=(n,),
        in_specs=[
            pl.BlockSpec((1, cin, hw), lambda i: (i, 0, 0)),
            pl.BlockSpec((9, c1, cin), lambda i: (0, 0, 0)),
            pl.BlockSpec((c1, 1), const2),
            pl.BlockSpec((9, c2, c1), lambda i: (0, 0, 0)),
            pl.BlockSpec((c2, 1), const2),
            pl.BlockSpec((9, c2, c2), lambda i: (0, 0, 0)),
            pl.BlockSpec((c2, 1), const2),
            pl.BlockSpec((nc, c2), const2),
            pl.BlockSpec((nc, 1), const2),
            pl.BlockSpec((2, hw), const2),
            pl.BlockSpec((2, ohw), const2),
            pl.BlockSpec((hw, ohw), const2),
        ],
        out_specs=[
            pl.BlockSpec((1, nc, 1), lambda i: (i, 0, 0)),
            pl.BlockSpec((1, c2, ohw), lambda i: (i, 0, 0)),
        ],
        scratch_shapes=[
            pltpu.VMEM((cin, hw + 2 * (w + 1)), jnp.float32),
            pltpu.VMEM((c1, hw + 2 * (w + 1)), jnp.float32),
            pltpu.VMEM((c2, ohw + 2 * (ow + 1)), jnp.float32),
        ],
    )

    pred3, feats3 = pl.pallas_call(
        functools.partial(_net_kernel, h=h, w=w),
        grid_spec=grid_spec,
        out_shape=(
            jax.ShapeDtypeStruct((n, nc, 1), jnp.float32),
            jax.ShapeDtypeStruct((n, c2, ohw), jnp.float32),
        ),
        compiler_params=pltpu.CompilerParams(
            dimension_semantics=("parallel",),     # one sample per TC on v7x
            vmem_limit_bytes=16 * 1024 * 1024,     # tiny footprint, v7x-safe
        ),
    )(x2, params["stem_w"], params["stem_b"], params["ds_w"], params["ds_b"],
      params["res_w"], params["res_b"], params["fc_wt"], params["fc_b"],
      m_full, m_half, dec)

    pred = pred3.reshape(n, nc)
    feats = feats3.reshape(n, c2, oh, ow)
    return pred, feats


# ----------------------------------------------------------------------------
# Pure-JAX reference (independent formulation, for correctness check)
# ----------------------------------------------------------------------------
def net_forward_ref(x_nchw, params):
    def conv(x, w_taps, b, stride):
        cout, cin = w_taps.shape[1], w_taps.shape[2]
        w = w_taps.reshape(3, 3, cout, cin).transpose(2, 3, 0, 1)  # OIHW
        y = lax.conv_general_dilated(
            x, w, window_strides=(stride, stride), padding=((1, 1), (1, 1)),
            dimension_numbers=("NCHW", "OIHW", "NCHW"),
            precision=lax.Precision.HIGHEST)
        return y + b.reshape(1, cout, 1, 1)

    h = jnp.maximum(conv(x_nchw, params["stem_w"], params["stem_b"], 1), 0.0)
    ds = jnp.maximum(conv(h, params["ds_w"], params["ds_b"], 2), 0.0)
    res = conv(ds, params["res_w"], params["res_b"], 1)
    trunk = jnp.maximum(res + ds, 0.0)
    pooled = jnp.mean(trunk, axis=(2, 3))
    logits = jnp.dot(pooled, params["fc_wt"].T,
                     precision=lax.Precision.HIGHEST) + params["fc_b"].T
    pred = jnp.tanh(logits)
    return pred, trunk


# ----------------------------------------------------------------------------
# Deterministic parameters (kernel-friendly layouts: (9, Cout, Cin), (Cout, 1))
# ----------------------------------------------------------------------------
def init_params(cin=4, c1=8, c2=16, num_classes=10):
    keys = jax.random.split(jax.random.PRNGKey(42), 8)

    def w(key, shape, fan_in):
        return jax.random.normal(key, shape, jnp.float32) / float(np.sqrt(fan_in))

    return {
        "stem_w": w(keys[0], (9, c1, cin), 9 * cin),
        "stem_b": 0.1 * w(keys[1], (c1, 1), 1),
        "ds_w":   w(keys[2], (9, c2, c1), 9 * c1),
        "ds_b":   0.1 * w(keys[3], (c2, 1), 1),
        "res_w":  w(keys[4], (9, c2, c2), 9 * c2),
        "res_b":  0.1 * w(keys[5], (c2, 1), 1),
        "fc_wt":  w(keys[6], (num_classes, c2), c2),
        "fc_b":   0.1 * w(keys[7], (num_classes, 1), 1),
    }


# ----------------------------------------------------------------------------
if __name__ == "__main__":
    N, CIN, H, W = 2, 4, 16, 16
    params = init_params(cin=CIN)

    x = jax.random.normal(jax.random.PRNGKey(0), (N, CIN, H, W), jnp.float32)

    fwd = jax.jit(net_forward)
    pred, feats = fwd(x, params)
    jax.block_until_ready((pred, feats))

    pred_ref, feats_ref = net_forward_ref(x, params)
    np.testing.assert_allclose(np.asarray(pred), np.asarray(pred_ref),
                               rtol=1e-4, atol=1e-4)
    np.testing.assert_allclose(np.asarray(feats), np.asarray(feats_ref),
                               rtol=1e-4, atol=1e-4)

    assert pred.shape == (N, 10) and feats.shape == (N, 16, H // 2, W // 2)
    print("KERNEL_OK")
</pallas_src>

<mosaic_0001>
module attributes {stable_mosaic.version = 11 : i64} {
  func.func @_net_kernel(%arg0: i32, %arg1: memref<1x4x256xf32, #tpu.memory_space<vmem>>, %arg2: memref<9x8x4xf32, #tpu.memory_space<vmem>>, %arg3: memref<8x1xf32, #tpu.memory_space<vmem>>, %arg4: memref<9x16x8xf32, #tpu.memory_space<vmem>>, %arg5: memref<16x1xf32, #tpu.memory_space<vmem>>, %arg6: memref<9x16x16xf32, #tpu.memory_space<vmem>>, %arg7: memref<16x1xf32, #tpu.memory_space<vmem>>, %arg8: memref<10x16xf32, #tpu.memory_space<vmem>>, %arg9: memref<10x1xf32, #tpu.memory_space<vmem>>, %arg10: memref<2x256xf32, #tpu.memory_space<vmem>>, %arg11: memref<2x64xf32, #tpu.memory_space<vmem>>, %arg12: memref<256x64xf32, #tpu.memory_space<vmem>>, %arg13: memref<1x10x1xf32, #tpu.memory_space<vmem>>, %arg14: memref<1x16x64xf32, #tpu.memory_space<vmem>>, %arg15: memref<4x290xf32, #tpu.memory_space<vmem>>, %arg16: memref<8x290xf32, #tpu.memory_space<vmem>>, %arg17: memref<16x82xf32, #tpu.memory_space<vmem>>) attributes {dimension_semantics = [#tpu.dimension_semantics<parallel>], iteration_bounds = array<i64: 2>, scalar_prefetch = 0 : i64, scratch_operands = 3 : i64, tpu.core_type = #tpu.core_type<tc>, window_params = [{transform_indices = @transform_0, window_bounds = array<i64: 1, 4, 256>}, {pipeline_mode = #tpu.pipeline_mode<synchronous>, transform_indices = @transform_1, window_bounds = array<i64: 9, 8, 4>}, {pipeline_mode = #tpu.pipeline_mode<synchronous>, transform_indices = @transform_2, window_bounds = array<i64: 8, 1>}, {pipeline_mode = #tpu.pipeline_mode<synchronous>, transform_indices = @transform_3, window_bounds = array<i64: 9, 16, 8>}, {pipeline_mode = #tpu.pipeline_mode<synchronous>, transform_indices = @transform_4, window_bounds = array<i64: 16, 1>}, {pipeline_mode = #tpu.pipeline_mode<synchronous>, transform_indices = @transform_5, window_bounds = array<i64: 9, 16, 16>}, {pipeline_mode = #tpu.pipeline_mode<synchronous>, transform_indices = @transform_6, window_bounds = array<i64: 16, 1>}, {pipeline_mode = #tpu.pipeline_mode<synchronous>, transform_indices = @transform_7, window_bounds = array<i64: 10, 16>}, {pipeline_mode = #tpu.pipeline_mode<synchronous>, transform_indices = @transform_8, window_bounds = array<i64: 10, 1>}, {pipeline_mode = #tpu.pipeline_mode<synchronous>, transform_indices = @transform_9, window_bounds = array<i64: 2, 256>}, {pipeline_mode = #tpu.pipeline_mode<synchronous>, transform_indices = @transform_10, window_bounds = array<i64: 2, 64>}, {pipeline_mode = #tpu.pipeline_mode<synchronous>, transform_indices = @transform_11, window_bounds = array<i64: 256, 64>}, {transform_indices = @transform_12, window_bounds = array<i64: 1, 10, 1>}, {transform_indices = @transform_13, window_bounds = array<i64: 1, 16, 64>}]} {
    %c0 = arith.constant 0 : index
    %c0_0 = arith.constant 0 : index
    %0 = vector.load %arg10[%c0, %c0_0] : memref<2x256xf32, #tpu.memory_space<vmem>>, vector<2x256xf32>
    %c0_1 = arith.constant 0 : index
    %c0_2 = arith.constant 0 : index
    %1 = vector.load %arg11[%c0_1, %c0_2] : memref<2x64xf32, #tpu.memory_space<vmem>>, vector<2x64xf32>
    %c0_3 = arith.constant 0 : index
    %c0_4 = arith.constant 0 : index
    %c0_5 = arith.constant 0 : index
    %2 = vector.load %arg1[%c0_3, %c0_4, %c0_5] : memref<1x4x256xf32, #tpu.memory_space<vmem>>, vector<1x4x256xf32>
    %3 = vector.shape_cast %2 : vector<1x4x256xf32> to vector<4x256xf32>
    %cst = arith.constant 0.000000e+00 : f32
    %4 = vector.broadcast %cst : f32 to vector<4x17xf32>
    %c0_6 = arith.constant 0 : index
    %c0_7 = arith.constant 0 : index
    %5 = vector.load %arg15[%c0_6, %c0_7] : memref<4x290xf32, #tpu.memory_space<vmem>>, vector<4x17xf32>
    tpu.vector_store %arg15[%c0_6, %c0_7], %4 {strides = array<i32>} : memref<4x290xf32, #tpu.memory_space<vmem>>, vector<4x17xf32>,
    %cst_8 = arith.constant 0.000000e+00 : f32
    %6 = vector.broadcast %cst_8 : f32 to vector<4x17xf32>
    %c0_9 = arith.constant 0 : index
    %c273 = arith.constant 273 : index
    %7 = vector.load %arg15[%c0_9, %c273] : memref<4x290xf32, #tpu.memory_space<vmem>>, vector<4x17xf32>
    tpu.vector_store %arg15[%c0_9, %c273], %6 {strides = array<i32>} : memref<4x290xf32, #tpu.memory_space<vmem>>, vector<4x17xf32>,
    %c0_10 = arith.constant 0 : index
    %c17 = arith.constant 17 : index
    %8 = vector.load %arg15[%c0_10, %c17] : memref<4x290xf32, #tpu.memory_space<vmem>>, vector<4x256xf32>
    tpu.vector_store %arg15[%c0_10, %c17], %3 {strides = array<i32>} : memref<4x290xf32, #tpu.memory_space<vmem>>, vector<4x256xf32>,
    %cst_11 = arith.constant 0.000000e+00 : f32
    %9 = vector.broadcast %cst_11 : f32 to vector<8x256xf32>
    %c0_12 = arith.constant 0 : index
    %c0_13 = arith.constant 0 : index
    %10 = vector.load %arg15[%c0_12, %c0_13] : memref<4x290xf32, #tpu.memory_space<vmem>>, vector<4x256xf32>
    %11 = vector.extract_strided_slice %0 {offsets = [0, 0], sizes = [1, 256], strides = [1, 1]} : vector<2x256xf32> to vector<1x256xf32>
    %12 = vector.broadcast %11 : vector<1x256xf32> to vector<4x256xf32>
    %13 = arith.mulf %10, %12 : vector<4x256xf32>
    %c0_14 = arith.constant 0 : index
    %c0_15 = arith.constant 0 : index
    %c0_16 = arith.constant 0 : index
    %14 = vector.load %arg2[%c0_14, %c0_15, %c0_16] : memref<9x8x4xf32, #tpu.memory_space<vmem>>, vector<1x8x4xf32>
    %15 = vector.shape_cast %14 : vector<1x8x4xf32> to vector<8x4xf32>
    %cst_17 = arith.constant dense<0.000000e+00> : vector<8x256xf32>
    %16 = tpu.matmul %15, %13, %cst_17 {dimension_numbers = #tpu.dot_dimension_numbers<[1], [0], [0], [1], [0, 0, 1, 1], [], []>} : vector<8x4xf32>, vector<4x256xf32>, vector<8x256xf32> -> vector<8x256xf32>
    %17 = arith.addf %9, %16 : vector<8x256xf32>
    %c0_18 = arith.constant 0 : index
    %c1 = arith.constant 1 : index
    %18 = vector.load %arg15[%c0_18, %c1] : memref<4x290xf32, #tpu.memory_space<vmem>>, vector<4x256xf32>
    %c1_19 = arith.constant 1 : index
    %c0_20 = arith.constant 0 : index
    %c0_21 = arith.constant 0 : index
    %19 = vector.load %arg2[%c1_19, %c0_20, %c0_21] : memref<9x8x4xf32, #tpu.memory_space<vmem>>, vector<1x8x4xf32>
    %20 = vector.shape_cast %19 : vector<1x8x4xf32> to vector<8x4xf32>
    %cst_22 = arith.constant dense<0.000000e+00> : vector<8x256xf32>
    %21 = tpu.matmul %20, %18, %cst_22 {dimension_numbers = #tpu.dot_dimension_numbers<[1], [0], [0], [1], [0, 0, 1, 1], [], []>} : vector<8x4xf32>, vector<4x256xf32>, vector<8x256xf32> -> vector<8x256xf32>
    %22 = arith.addf %17, %21 : vector<8x256xf32>
    %c0_23 = arith.constant 0 : index
    %c2 = arith.constant 2 : index
    %23 = vector.load %arg15[%c0_23, %c2] : memref<4x290xf32, #tpu.memory_space<vmem>>, vector<4x256xf32>
    %24 = vector.extract_strided_slice %0 {offsets = [1, 0], sizes = [1, 256], strides = [1, 1]} : vector<2x256xf32> to vector<1x256xf32>
    %25 = vector.broadcast %24 : vector<1x256xf32> to vector<4x256xf32>
    %26 = arith.mulf %23, %25 : vector<4x256xf32>
    %c2_24 = arith.constant 2 : index
    %c0_25 = arith.constant 0 : index
    %c0_26 = arith.constant 0 : index
    %27 = vector.load %arg2[%c2_24, %c0_25, %c0_26] : memref<9x8x4xf32, #tpu.memory_space<vmem>>, vector<1x8x4xf32>
    %28 = vector.shape_cast %27 : vector<1x8x4xf32> to vector<8x4xf32>
    %cst_27 = arith.constant dense<0.000000e+00> : vector<8x256xf32>
    %29 = tpu.matmul %28, %26, %cst_27 {dimension_numbers = #tpu.dot_dimension_numbers<[1], [0], [0], [1], [0, 0, 1, 1], [], []>} : vector<8x4xf32>, vector<4x256xf32>, vector<8x256xf32> -> vector<8x256xf32>
    %30 = arith.addf %22, %29 : vector<8x256xf32>
    %c0_28 = arith.constant 0 : index
    %c16 = arith.constant 16 : index
    %31 = vector.load %arg15[%c0_28, %c16] : memref<4x290xf32, #tpu.memory_space<vmem>>, vector<4x256xf32>
    %32 = vector.extract_strided_slice %0 {offsets = [0, 0], sizes = [1, 256], strides = [1, 1]} : vector<2x256xf32> to vector<1x256xf32>
    %33 = vector.broadcast %32 : vector<1x256xf32> to vector<4x256xf32>
    %34 = arith.mulf %31, %33 : vector<4x256xf32>
    %c3 = arith.constant 3 : index
    %c0_29 = arith.constant 0 : index
    %c0_30 = arith.constant 0 : index
    %35 = vector.load %arg2[%c3, %c0_29, %c0_30] : memref<9x8x4xf32, #tpu.memory_space<vmem>>, vector<1x8x4xf32>
    %36 = vector.shape_cast %35 : vector<1x8x4xf32> to vector<8x4xf32>
    %cst_31 = arith.constant dense<0.000000e+00> : vector<8x256xf32>
    %37 = tpu.matmul %36, %34, %cst_31 {dimension_numbers = #tpu.dot_dimension_numbers<[1], [0], [0], [1], [0, 0, 1, 1], [], []>} : vector<8x4xf32>, vector<4x256xf32>, vector<8x256xf32> -> vector<8x256xf32>
    %38 = arith.addf %30, %37 : vector<8x256xf32>
    %c0_32 = arith.constant 0 : index
    %c17_33 = arith.constant 17 : index
    %39 = vector.load %arg15[%c0_32, %c17_33] : memref<4x290xf32, #tpu.memory_space<vmem>>, vector<4x256xf32>
    %c4 = arith.constant 4 : index
    %c0_34 = arith.constant 0 : index
    %c0_35 = arith.constant 0 : index
    %40 = vector.load %arg2[%c4, %c0_34, %c0_35] : memref<9x8x4xf32, #tpu.memory_space<vmem>>, vector<1x8x4xf32>
    %41 = vector.shape_cast %40 : vector<1x8x4xf32> to vector<8x4xf32>
    %cst_36 = arith.constant dense<0.000000e+00> : vector<8x256xf32>
    %42 = tpu.matmul %41, %39, %cst_36 {dimension_numbers = #tpu.dot_dimension_numbers<[1], [0], [0], [1], [0, 0, 1, 1], [], []>} : vector<8x4xf32>, vector<4x256xf32>, vector<8x256xf32> -> vector<8x256xf32>
    %43 = arith.addf %38, %42 : vector<8x256xf32>
    %c0_37 = arith.constant 0 : index
    %c18 = arith.constant 18 : index
    %44 = vector.load %arg15[%c0_37, %c18] : memref<4x290xf32, #tpu.memory_space<vmem>>, vector<4x256xf32>
    %45 = vector.extract_strided_slice %0 {offsets = [1, 0], sizes = [1, 256], strides = [1, 1]} : vector<2x256xf32> to vector<1x256xf32>
    %46 = vector.broadcast %45 : vector<1x256xf32> to vector<4x256xf32>
    %47 = arith.mulf %44, %46 : vector<4x256xf32>
    %c5 = arith.constant 5 : index
    %c0_38 = arith.constant 0 : index
    %c0_39 = arith.constant 0 : index
    %48 = vector.load %arg2[%c5, %c0_38, %c0_39] : memref<9x8x4xf32, #tpu.memory_space<vmem>>, vector<1x8x4xf32>
    %49 = vector.shape_cast %48 : vector<1x8x4xf32> to vector<8x4xf32>
    %cst_40 = arith.constant dense<0.000000e+00> : vector<8x256xf32>
    %50 = tpu.matmul %49, %47, %cst_40 {dimension_numbers = #tpu.dot_dimension_numbers<[1], [0], [0], [1], [0, 0, 1, 1], [], []>} : vector<8x4xf32>, vector<4x256xf32>, vector<8x256xf32> -> vector<8x256xf32>
    %51 = arith.addf %43, %50 : vector<8x256xf32>
    %c0_41 = arith.constant 0 : index
    %c32 = arith.constant 32 : index
    %52 = vector.load %arg15[%c0_41, %c32] : memref<4x290xf32, #tpu.memory_space<vmem>>, vector<4x256xf32>
    %53 = vector.extract_strided_slice %0 {offsets = [0, 0], sizes = [1, 256], strides = [1, 1]} : vector<2x256xf32> to vector<1x256xf32>
    %54 = vector.broadcast %53 : vector<1x256xf32> to vector<4x256xf32>
    %55 = arith.mulf %52, %54 : vector<4x256xf32>
    %c6 = arith.constant 6 : index
    %c0_42 = arith.constant 0 : index
    %c0_43 = arith.constant 0 : index
    %56 = vector.load %arg2[%c6, %c0_42, %c0_43] : memref<9x8x4xf32, #tpu.memory_space<vmem>>, vector<1x8x4xf32>
    %57 = vector.shape_cast %56 : vector<1x8x4xf32> to vector<8x4xf32>
    %cst_44 = arith.constant dense<0.000000e+00> : vector<8x256xf32>
    %58 = tpu.matmul %57, %55, %cst_44 {dimension_numbers = #tpu.dot_dimension_numbers<[1], [0], [0], [1], [0, 0, 1, 1], [], []>} : vector<8x4xf32>, vector<4x256xf32>, vector<8x256xf32> -> vector<8x256xf32>
    %59 = arith.addf %51, %58 : vector<8x256xf32>
    %c0_45 = arith.constant 0 : index
    %c33 = arith.constant 33 : index
    %60 = vector.load %arg15[%c0_45, %c33] : memref<4x290xf32, #tpu.memory_space<vmem>>, vector<4x256xf32>
    %c7 = arith.constant 7 : index
    %c0_46 = arith.constant 0 : index
    %c0_47 = arith.constant 0 : index
    %61 = vector.load %arg2[%c7, %c0_46, %c0_47] : memref<9x8x4xf32, #tpu.memory_space<vmem>>, vector<1x8x4xf32>
    %62 = vector.shape_cast %61 : vector<1x8x4xf32> to vector<8x4xf32>
    %cst_48 = arith.constant dense<0.000000e+00> : vector<8x256xf32>
    %63 = tpu.matmul %62, %60, %cst_48 {dimension_numbers = #tpu.dot_dimension_numbers<[1], [0], [0], [1], [0, 0, 1, 1], [], []>} : vector<8x4xf32>, vector<4x256xf32>, vector<8x256xf32> -> vector<8x256xf32>
    %64 = arith.addf %59, %63 : vector<8x256xf32>
    %c0_49 = arith.constant 0 : index
    %c34 = arith.constant 34 : index
    %65 = vector.load %arg15[%c0_49, %c34] : memref<4x290xf32, #tpu.memory_space<vmem>>, vector<4x256xf32>
    %66 = vector.extract_strided_slice %0 {offsets = [1, 0], sizes = [1, 256], strides = [1, 1]} : vector<2x256xf32> to vector<1x256xf32>
    %67 = vector.broadcast %66 : vector<1x256xf32> to vector<4x256xf32>
    %68 = arith.mulf %65, %67 : vector<4x256xf32>
    %c8 = arith.constant 8 : index
    %c0_50 = arith.constant 0 : index
    %c0_51 = arith.constant 0 : index
    %69 = vector.load %arg2[%c8, %c0_50, %c0_51] : memref<9x8x4xf32, #tpu.memory_space<vmem>>, vector<1x8x4xf32>
    %70 = vector.shape_cast %69 : vector<1x8x4xf32> to vector<8x4xf32>
    %cst_52 = arith.constant dense<0.000000e+00> : vector<8x256xf32>
    %71 = tpu.matmul %70, %68, %cst_52 {dimension_numbers = #tpu.dot_dimension_numbers<[1], [0], [0], [1], [0, 0, 1, 1], [], []>} : vector<8x4xf32>, vector<4x256xf32>, vector<8x256xf32> -> vector<8x256xf32>
    %72 = arith.addf %64, %71 : vector<8x256xf32>
    %c0_53 = arith.constant 0 : index
    %c0_54 = arith.constant 0 : index
    %73 = vector.load %arg3[%c0_53, %c0_54] : memref<8x1xf32, #tpu.memory_space<vmem>>, vector<8x1xf32>
    %74 = vector.broadcast %73 : vector<8x1xf32> to vector<8x256xf32>
    %75 = arith.addf %72, %74 : vector<8x256xf32>
    %cst_55 = arith.constant 0.000000e+00 : f32
    %76 = vector.broadcast %cst_55 : f32 to vector<8x256xf32>
    %77 = arith.maximumf %75, %76 : vector<8x256xf32>
    %cst_56 = arith.constant 0.000000e+00 : f32
    %78 = vector.broadcast %cst_56 : f32 to vector<8x17xf32>
    %c0_57 = arith.constant 0 : index
    %c0_58 = arith.constant 0 : index
    %79 = vector.load %arg16[%c0_57, %c0_58] : memref<8x290xf32, #tpu.memory_space<vmem>>, vector<8x17xf32>
    tpu.vector_store %arg16[%c0_57, %c0_58], %78 {strides = array<i32>} : memref<8x290xf32, #tpu.memory_space<vmem>>, vector<8x17xf32>,
    %cst_59 = arith.constant 0.000000e+00 : f32
    %80 = vector.broadcast %cst_59 : f32 to vector<8x17xf32>
    %c0_60 = arith.constant 0 : index
    %c273_61 = arith.constant 273 : index
    %81 = vector.load %arg16[%c0_60, %c273_61] : memref<8x290xf32, #tpu.memory_space<vmem>>, vector<8x17xf32>
    tpu.vector_store %arg16[%c0_60, %c273_61], %80 {strides = array<i32>} : memref<8x290xf32, #tpu.memory_space<vmem>>, vector<8x17xf32>,
    %c0_62 = arith.constant 0 : index
    %c17_63 = arith.constant 17 : index
    %82 = vector.load %arg16[%c0_62, %c17_63] : memref<8x290xf32, #tpu.memory_space<vmem>>, vector<8x256xf32>
    tpu.vector_store %arg16[%c0_62, %c17_63], %77 {strides = array<i32>} : memref<8x290xf32, #tpu.memory_space<vmem>>, vector<8x256xf32>,
    %cst_64 = arith.constant 0.000000e+00 : f32
    %83 = vector.broadcast %cst_64 : f32 to vector<16x256xf32>
    %c0_65 = arith.constant 0 : index
    %c0_66 = arith.constant 0 : index
    %84 = vector.load %arg16[%c0_65, %c0_66] : memref<8x290xf32, #tpu.memory_space<vmem>>, vector<8x256xf32>
    %85 = vector.extract_strided_slice %0 {offsets = [0, 0], sizes = [1, 256], strides = [1, 1]} : vector<2x256xf32> to vector<1x256xf32>
    %86 = vector.broadcast %85 : vector<1x256xf32> to vector<8x256xf32>
    %87 = arith.mulf %84, %86 : vector<8x256xf32>
    %c0_67 = arith.constant 0 : index
    %c0_68 = arith.constant 0 : index
    %c0_69 = arith.constant 0 : index
    %88 = vector.load %arg4[%c0_67, %c0_68, %c0_69] : memref<9x16x8xf32, #tpu.memory_space<vmem>>, vector<1x16x8xf32>
    %89 = vector.shape_cast %88 : vector<1x16x8xf32> to vector<16x8xf32>
    %cst_70 = arith.constant dense<0.000000e+00> : vector<16x256xf32>
    %90 = tpu.matmul %89, %87, %cst_70 {dimension_numbers = #tpu.dot_dimension_numbers<[1], [0], [0], [1], [0, 0, 1, 1], [], []>} : vector<16x8xf32>, vector<8x256xf32>, vector<16x256xf32> -> vector<16x256xf32>
    %91 = arith.addf %83, %90 : vector<16x256xf32>
    %c0_71 = arith.constant 0 : index
    %c1_72 = arith.constant 1 : index
    %92 = vector.load %arg16[%c0_71, %c1_72] : memref<8x290xf32, #tpu.memory_space<vmem>>, vector<8x256xf32>
    %c1_73 = arith.constant 1 : index
    %c0_74 = arith.constant 0 : index
    %c0_75 = arith.constant 0 : index
    %93 = vector.load %arg4[%c1_73, %c0_74, %c0_75] : memref<9x16x8xf32, #tpu.memory_space<vmem>>, vector<1x16x8xf32>
    %94 = vector.shape_cast %93 : vector<1x16x8xf32> to vector<16x8xf32>
    %cst_76 = arith.constant dense<0.000000e+00> : vector<16x256xf32>
    %95 = tpu.matmul %94, %92, %cst_76 {dimension_numbers = #tpu.dot_dimension_numbers<[1], [0], [0], [1], [0, 0, 1, 1], [], []>} : vector<16x8xf32>, vector<8x256xf32>, vector<16x256xf32> -> vector<16x256xf32>
    %96 = arith.addf %91, %95 : vector<16x256xf32>
    %c0_77 = arith.constant 0 : index
    %c2_78 = arith.constant 2 : index
    %97 = vector.load %arg16[%c0_77, %c2_78] : memref<8x290xf32, #tpu.memory_space<vmem>>, vector<8x256xf32>
    %98 = vector.extract_strided_slice %0 {offsets = [1, 0], sizes = [1, 256], strides = [1, 1]} : vector<2x256xf32> to vector<1x256xf32>
    %99 = vector.broadcast %98 : vector<1x256xf32> to vector<8x256xf32>
    %100 = arith.mulf %97, %99 : vector<8x256xf32>
    %c2_79 = arith.constant 2 : index
    %c0_80 = arith.constant 0 : index
    %c0_81 = arith.constant 0 : index
    %101 = vector.load %arg4[%c2_79, %c0_80, %c0_81] : memref<9x16x8xf32, #tpu.memory_space<vmem>>, vector<1x16x8xf32>
    %102 = vector.shape_cast %101 : vector<1x16x8xf32> to vector<16x8xf32>
    %cst_82 = arith.constant dense<0.000000e+00> : vector<16x256xf32>
    %103 = tpu.matmul %102, %100, %cst_82 {dimension_numbers = #tpu.dot_dimension_numbers<[1], [0], [0], [1], [0, 0, 1, 1], [], []>} : vector<16x8xf32>, vector<8x256xf32>, vector<16x256xf32> -> vector<16x256xf32>
    %104 = arith.addf %96, %103 : vector<16x256xf32>
    %c0_83 = arith.constant 0 : index
    %c16_84 = arith.constant 16 : index
    %105 = vector.load %arg16[%c0_83, %c16_84] : memref<8x290xf32, #tpu.memory_space<vmem>>, vector<8x256xf32>
    %106 = vector.extract_strided_slice %0 {offsets = [0, 0], sizes = [1, 256], strides = [1, 1]} : vector<2x256xf32> to vector<1x256xf32>
    %107 = vector.broadcast %106 : vector<1x256xf32> to vector<8x256xf32>
    %108 = arith.mulf %105, %107 : vector<8x256xf32>
    %c3_85 = arith.constant 3 : index
    %c0_86 = arith.constant 0 : index
    %c0_87 = arith.constant 0 : index
    %109 = vector.load %arg4[%c3_85, %c0_86, %c0_87] : memref<9x16x8xf32, #tpu.memory_space<vmem>>, vector<1x16x8xf32>
    %110 = vector.shape_cast %109 : vector<1x16x8xf32> to vector<16x8xf32>
    %cst_88 = arith.constant dense<0.000000e+00> : vector<16x256xf32>
    %111 = tpu.matmul %110, %108, %cst_88 {dimension_numbers = #tpu.dot_dimension_numbers<[1], [0], [0], [1], [0, 0, 1, 1], [], []>} : vector<16x8xf32>, vector<8x256xf32>, vector<16x256xf32> -> vector<16x256xf32>
    %112 = arith.addf %104, %111 : vector<16x256xf32>
    %c0_89 = arith.constant 0 : index
    %c17_90 = arith.constant 17 : index
    %113 = vector.load %arg16[%c0_89, %c17_90] : memref<8x290xf32, #tpu.memory_space<vmem>>, vector<8x256xf32>
    %c4_91 = arith.constant 4 : index
    %c0_92 = arith.constant 0 : index
    %c0_93 = arith.constant 0 : index
    %114 = vector.load %arg4[%c4_91, %c0_92, %c0_93] : memref<9x16x8xf32, #tpu.memory_space<vmem>>, vector<1x16x8xf32>
    %115 = vector.shape_cast %114 : vector<1x16x8xf32> to vector<16x8xf32>
    %cst_94 = arith.constant dense<0.000000e+00> : vector<16x256xf32>
    %116 = tpu.matmul %115, %113, %cst_94 {dimension_numbers = #tpu.dot_dimension_numbers<[1], [0], [0], [1], [0, 0, 1, 1], [], []>} : vector<16x8xf32>, vector<8x256xf32>, vector<16x256xf32> -> vector<16x256xf32>
    %117 = arith.addf %112, %116 : vector<16x256xf32>
    %c0_95 = arith.constant 0 : index
    %c18_96 = arith.constant 18 : index
    %118 = vector.load %arg16[%c0_95, %c18_96] : memref<8x290xf32, #tpu.memory_space<vmem>>, vector<8x256xf32>
    %119 = vector.extract_strided_slice %0 {offsets = [1, 0], sizes = [1, 256], strides = [1, 1]} : vector<2x256xf32> to vector<1x256xf32>
    %120 = vector.broadcast %119 : vector<1x256xf32> to vector<8x256xf32>
    %121 = arith.mulf %118, %120 : vector<8x256xf32>
    %c5_97 = arith.constant 5 : index
    %c0_98 = arith.constant 0 : index
    %c0_99 = arith.constant 0 : index
    %122 = vector.load %arg4[%c5_97, %c0_98, %c0_99] : memref<9x16x8xf32, #tpu.memory_space<vmem>>, vector<1x16x8xf32>
    %123 = vector.shape_cast %122 : vector<1x16x8xf32> to vector<16x8xf32>
    %cst_100 = arith.constant dense<0.000000e+00> : vector<16x256xf32>
    %124 = tpu.matmul %123, %121, %cst_100 {dimension_numbers = #tpu.dot_dimension_numbers<[1], [0], [0], [1], [0, 0, 1, 1], [], []>} : vector<16x8xf32>, vector<8x256xf32>, vector<16x256xf32> -> vector<16x256xf32>
    %125 = arith.addf %117, %124 : vector<16x256xf32>
    %c0_101 = arith.constant 0 : index
    %c32_102 = arith.constant 32 : index
    %126 = vector.load %arg16[%c0_101, %c32_102] : memref<8x290xf32, #tpu.memory_space<vmem>>, vector<8x256xf32>
    %127 = vector.extract_strided_slice %0 {offsets = [0, 0], sizes = [1, 256], strides = [1, 1]} : vector<2x256xf32> to vector<1x256xf32>
    %128 = vector.broadcast %127 : vector<1x256xf32> to vector<8x256xf32>
    %129 = arith.mulf %126, %128 : vector<8x256xf32>
    %c6_103 = arith.constant 6 : index
    %c0_104 = arith.constant 0 : index
    %c0_105 = arith.constant 0 : index
    %130 = vector.load %arg4[%c6_103, %c0_104, %c0_105] : memref<9x16x8xf32, #tpu.memory_space<vmem>>, vector<1x16x8xf32>
    %131 = vector.shape_cast %130 : vector<1x16x8xf32> to vector<16x8xf32>
    %cst_106 = arith.constant dense<0.000000e+00> : vector<16x256xf32>
    %132 = tpu.matmul %131, %129, %cst_106 {dimension_numbers = #tpu.dot_dimension_numbers<[1], [0], [0], [1], [0, 0, 1, 1], [], []>} : vector<16x8xf32>, vector<8x256xf32>, vector<16x256xf32> -> vector<16x256xf32>
    %133 = arith.addf %125, %132 : vector<16x256xf32>
    %c0_107 = arith.constant 0 : index
    %c33_108 = arith.constant 33 : index
    %134 = vector.load %arg16[%c0_107, %c33_108] : memref<8x290xf32, #tpu.memory_space<vmem>>, vector<8x256xf32>
    %c7_109 = arith.constant 7 : index
    %c0_110 = arith.constant 0 : index
    %c0_111 = arith.constant 0 : index
    %135 = vector.load %arg4[%c7_109, %c0_110, %c0_111] : memref<9x16x8xf32, #tpu.memory_space<vmem>>, vector<1x16x8xf32>
    %136 = vector.shape_cast %135 : vector<1x16x8xf32> to vector<16x8xf32>
    %cst_112 = arith.constant dense<0.000000e+00> : vector<16x256xf32>
    %137 = tpu.matmul %136, %134, %cst_112 {dimension_numbers = #tpu.dot_dimension_numbers<[1], [0], [0], [1], [0, 0, 1, 1], [], []>} : vector<16x8xf32>, vector<8x256xf32>, vector<16x256xf32> -> vector<16x256xf32>
    %138 = arith.addf %133, %137 : vector<16x256xf32>
    %c0_113 = arith.constant 0 : index
    %c34_114 = arith.constant 34 : index
    %139 = vector.load %arg16[%c0_113, %c34_114] : memref<8x290xf32, #tpu.memory_space<vmem>>, vector<8x256xf32>
    %140 = vector.extract_strided_slice %0 {offsets = [1, 0], sizes = [1, 256], strides = [1, 1]} : vector<2x256xf32> to vector<1x256xf32>
    %141 = vector.broadcast %140 : vector<1x256xf32> to vector<8x256xf32>
    %142 = arith.mulf %139, %141 : vector<8x256xf32>
    %c8_115 = arith.constant 8 : index
    %c0_116 = arith.constant 0 : index
    %c0_117 = arith.constant 0 : index
    %143 = vector.load %arg4[%c8_115, %c0_116, %c0_117] : memref<9x16x8xf32, #tpu.memory_space<vmem>>, vector<1x16x8xf32>
    %144 = vector.shape_cast %143 : vector<1x16x8xf32> to vector<16x8xf32>
    %cst_118 = arith.constant dense<0.000000e+00> : vector<16x256xf32>
    %145 = tpu.matmul %144, %142, %cst_118 {dimension_numbers = #tpu.dot_dimension_numbers<[1], [0], [0], [1], [0, 0, 1, 1], [], []>} : vector<16x8xf32>, vector<8x256xf32>, vector<16x256xf32> -> vector<16x256xf32>
    %146 = arith.addf %138, %145 : vector<16x256xf32>
    %c0_119 = arith.constant 0 : index
    %c0_120 = arith.constant 0 : index
    %147 = vector.load %arg5[%c0_119, %c0_120] : memref<16x1xf32, #tpu.memory_space<vmem>>, vector<16x1xf32>
    %148 = vector.broadcast %147 : vector<16x1xf32> to vector<16x256xf32>
    %149 = arith.addf %146, %148 : vector<16x256xf32>
    %c0_121 = arith.constant 0 : index
    %c0_122 = arith.constant 0 : index
    %150 = vector.load %arg12[%c0_121, %c0_122] : memref<256x64xf32, #tpu.memory_space<vmem>>, vector<256x64xf32>
    %cst_123 = arith.constant dense<0.000000e+00> : vector<16x64xf32>
    %151 = tpu.matmul %149, %150, %cst_123 {dimension_numbers = #tpu.dot_dimension_numbers<[1], [0], [0], [1], [0, 0, 1, 1], [], []>} : vector<16x256xf32>, vector<256x64xf32>, vector<16x64xf32> -> vector<16x64xf32>
    %cst_124 = arith.constant 0.000000e+00 : f32
    %152 = vector.broadcast %cst_124 : f32 to vector<16x64xf32>
    %153 = arith.maximumf %151, %152 : vector<16x64xf32>
    %cst_125 = arith.constant 0.000000e+00 : f32
    %154 = vector.broadcast %cst_125 : f32 to vector<16x9xf32>
    %c0_126 = arith.constant 0 : index
    %c0_127 = arith.constant 0 : index
    %155 = vector.load %arg17[%c0_126, %c0_127] : memref<16x82xf32, #tpu.memory_space<vmem>>, vector<16x9xf32>
    tpu.vector_store %arg17[%c0_126, %c0_127], %154 {strides = array<i32>} : memref<16x82xf32, #tpu.memory_space<vmem>>, vector<16x9xf32>,
    %cst_128 = arith.constant 0.000000e+00 : f32
    %156 = vector.broadcast %cst_128 : f32 to vector<16x9xf32>
    %c0_129 = arith.constant 0 : index
    %c73 = arith.constant 73 : index
    %157 = vector.load %arg17[%c0_129, %c73] : memref<16x82xf32, #tpu.memory_space<vmem>>, vector<16x9xf32>
    tpu.vector_store %arg17[%c0_129, %c73], %156 {strides = array<i32>} : memref<16x82xf32, #tpu.memory_space<vmem>>, vector<16x9xf32>,
    %c0_130 = arith.constant 0 : index
    %c9 = arith.constant 9 : index
    %158 = vector.load %arg17[%c0_130, %c9] : memref<16x82xf32, #tpu.memory_space<vmem>>, vector<16x64xf32>
    tpu.vector_store %arg17[%c0_130, %c9], %153 {strides = array<i32>} : memref<16x82xf32, #tpu.memory_space<vmem>>, vector<16x64xf32>,
    %cst_131 = arith.constant 0.000000e+00 : f32
    %159 = vector.broadcast %cst_131 : f32 to vector<16x64xf32>
    %c0_132 = arith.constant 0 : index
    %c0_133 = arith.constant 0 : index
    %160 = vector.load %arg17[%c0_132, %c0_133] : memref<16x82xf32, #tpu.memory_space<vmem>>, vector<16x64xf32>
    %161 = vector.extract_strided_slice %1 {offsets = [0, 0], sizes = [1, 64], strides = [1, 1]} : vector<2x64xf32> to vector<1x64xf32>
    %162 = vector.broadcast %161 : vector<1x64xf32> to vector<16x64xf32>
    %163 = arith.mulf %160, %162 : vector<16x64xf32>
    %c0_134 = arith.constant 0 : index
    %c0_135 = arith.constant 0 : index
    %c0_136 = arith.constant 0 : index
    %164 = vector.load %arg6[%c0_134, %c0_135, %c0_136] : memref<9x16x16xf32, #tpu.memory_space<vmem>>, vector<1x16x16xf32>
    %165 = vector.shape_cast %164 : vector<1x16x16xf32> to vector<16x16xf32>
    %cst_137 = arith.constant dense<0.000000e+00> : vector<16x64xf32>
    %166 = tpu.matmul %165, %163, %cst_137 {dimension_numbers = #tpu.dot_dimension_numbers<[1], [0], [0], [1], [0, 0, 1, 1], [], []>} : vector<16x16xf32>, vector<16x64xf32>, vector<16x64xf32> -> vector<16x64xf32>
    %167 = arith.addf %159, %166 : vector<16x64xf32>
    %c0_138 = arith.constant 0 : index
    %c1_139 = arith.constant 1 : index
    %168 = vector.load %arg17[%c0_138, %c1_139] : memref<16x82xf32, #tpu.memory_space<vmem>>, vector<16x64xf32>
    %c1_140 = arith.constant 1 : index
    %c0_141 = arith.constant 0 : index
    %c0_142 = arith.constant 0 : index
    %169 = vector.load %arg6[%c1_140, %c0_141, %c0_142] : memref<9x16x16xf32, #tpu.memory_space<vmem>>, vector<1x16x16xf32>
    %170 = vector.shape_cast %169 : vector<1x16x16xf32> to vector<16x16xf32>
    %cst_143 = arith.constant dense<0.000000e+00> : vector<16x64xf32>
    %171 = tpu.matmul %170, %168, %cst_143 {dimension_numbers = #tpu.dot_dimension_numbers<[1], [0], [0], [1], [0, 0, 1, 1], [], []>} : vector<16x16xf32>, vector<16x64xf32>, vector<16x64xf32> -> vector<16x64xf32>
    %172 = arith.addf %167, %171 : vector<16x64xf32>
    %c0_144 = arith.constant 0 : index
    %c2_145 = arith.constant 2 : index
    %173 = vector.load %arg17[%c0_144, %c2_145] : memref<16x82xf32, #tpu.memory_space<vmem>>, vector<16x64xf32>
    %174 = vector.extract_strided_slice %1 {offsets = [1, 0], sizes = [1, 64], strides = [1, 1]} : vector<2x64xf32> to vector<1x64xf32>
    %175 = vector.broadcast %174 : vector<1x64xf32> to vector<16x64xf32>
    %176 = arith.mulf %173, %175 : vector<16x64xf32>
    %c2_146 = arith.constant 2 : index
    %c0_147 = arith.constant 0 : index
    %c0_148 = arith.constant 0 : index
    %177 = vector.load %arg6[%c2_146, %c0_147, %c0_148] : memref<9x16x16xf32, #tpu.memory_space<vmem>>, vector<1x16x16xf32>
    %178 = vector.shape_cast %177 : vector<1x16x16xf32> to vector<16x16xf32>
    %cst_149 = arith.constant dense<0.000000e+00> : vector<16x64xf32>
    %179 = tpu.matmul %178, %176, %cst_149 {dimension_numbers = #tpu.dot_dimension_numbers<[1], [0], [0], [1], [0, 0, 1, 1], [], []>} : vector<16x16xf32>, vector<16x64xf32>, vector<16x64xf32> -> vector<16x64xf32>
    %180 = arith.addf %172, %179 : vector<16x64xf32>
    %c0_150 = arith.constant 0 : index
    %c8_151 = arith.constant 8 : index
    %181 = vector.load %arg17[%c0_150, %c8_151] : memref<16x82xf32, #tpu.memory_space<vmem>>, vector<16x64xf32>
    %182 = vector.extract_strided_slice %1 {offsets = [0, 0], sizes = [1, 64], strides = [1, 1]} : vector<2x64xf32> to vector<1x64xf32>
    %183 = vector.broadcast %182 : vector<1x64xf32> to vector<16x64xf32>
    %184 = arith.mulf %181, %183 : vector<16x64xf32>
    %c3_152 = arith.constant 3 : index
    %c0_153 = arith.constant 0 : index
    %c0_154 = arith.constant 0 : index
    %185 = vector.load %arg6[%c3_152, %c0_153, %c0_154] : memref<9x16x16xf32, #tpu.memory_space<vmem>>, vector<1x16x16xf32>
    %186 = vector.shape_cast %185 : vector<1x16x16xf32> to vector<16x16xf32>
    %cst_155 = arith.constant dense<0.000000e+00> : vector<16x64xf32>
    %187 = tpu.matmul %186, %184, %cst_155 {dimension_numbers = #tpu.dot_dimension_numbers<[1], [0], [0], [1], [0, 0, 1, 1], [], []>} : vector<16x16xf32>, vector<16x64xf32>, vector<16x64xf32> -> vector<16x64xf32>
    %188 = arith.addf %180, %187 : vector<16x64xf32>
    %c0_156 = arith.constant 0 : index
    %c9_157 = arith.constant 9 : index
    %189 = vector.load %arg17[%c0_156, %c9_157] : memref<16x82xf32, #tpu.memory_space<vmem>>, vector<16x64xf32>
    %c4_158 = arith.constant 4 : index
    %c0_159 = arith.constant 0 : index
    %c0_160 = arith.constant 0 : index
    %190 = vector.load %arg6[%c4_158, %c0_159, %c0_160] : memref<9x16x16xf32, #tpu.memory_space<vmem>>, vector<1x16x16xf32>
    %191 = vector.shape_cast %190 : vector<1x16x16xf32> to vector<16x16xf32>
    %cst_161 = arith.constant dense<0.000000e+00> : vector<16x64xf32>
    %192 = tpu.matmul %191, %189, %cst_161 {dimension_numbers = #tpu.dot_dimension_numbers<[1], [0], [0], [1], [0, 0, 1, 1], [], []>} : vector<16x16xf32>, vector<16x64xf32>, vector<16x64xf32> -> vector<16x64xf32>
    %193 = arith.addf %188, %192 : vector<16x64xf32>
    %c0_162 = arith.constant 0 : index
    %c10 = arith.constant 10 : index
    %194 = vector.load %arg17[%c0_162, %c10] : memref<16x82xf32, #tpu.memory_space<vmem>>, vector<16x64xf32>
    %195 = vector.extract_strided_slice %1 {offsets = [1, 0], sizes = [1, 64], strides = [1, 1]} : vector<2x64xf32> to vector<1x64xf32>
    %196 = vector.broadcast %195 : vector<1x64xf32> to vector<16x64xf32>
    %197 = arith.mulf %194, %196 : vector<16x64xf32>
    %c5_163 = arith.constant 5 : index
    %c0_164 = arith.constant 0 : index
    %c0_165 = arith.constant 0 : index
    %198 = vector.load %arg6[%c5_163, %c0_164, %c0_165] : memref<9x16x16xf32, #tpu.memory_space<vmem>>, vector<1x16x16xf32>
    %199 = vector.shape_cast %198 : vector<1x16x16xf32> to vector<16x16xf32>
    %cst_166 = arith.constant dense<0.000000e+00> : vector<16x64xf32>
    %200 = tpu.matmul %199, %197, %cst_166 {dimension_numbers = #tpu.dot_dimension_numbers<[1], [0], [0], [1], [0, 0, 1, 1], [], []>} : vector<16x16xf32>, vector<16x64xf32>, vector<16x64xf32> -> vector<16x64xf32>
    %201 = arith.addf %193, %200 : vector<16x64xf32>
    %c0_167 = arith.constant 0 : index
    %c16_168 = arith.constant 16 : index
    %202 = vector.load %arg17[%c0_167, %c16_168] : memref<16x82xf32, #tpu.memory_space<vmem>>, vector<16x64xf32>
    %203 = vector.extract_strided_slice %1 {offsets = [0, 0], sizes = [1, 64], strides = [1, 1]} : vector<2x64xf32> to vector<1x64xf32>
    %204 = vector.broadcast %203 : vector<1x64xf32> to vector<16x64xf32>
    %205 = arith.mulf %202, %204 : vector<16x64xf32>
    %c6_169 = arith.constant 6 : index
    %c0_170 = arith.constant 0 : index
    %c0_171 = arith.constant 0 : index
    %206 = vector.load %arg6[%c6_169, %c0_170, %c0_171] : memref<9x16x16xf32, #tpu.memory_space<vmem>>, vector<1x16x16xf32>
    %207 = vector.shape_cast %206 : vector<1x16x16xf32> to vector<16x16xf32>
    %cst_172 = arith.constant dense<0.000000e+00> : vector<16x64xf32>
    %208 = tpu.matmul %207, %205, %cst_172 {dimension_numbers = #tpu.dot_dimension_numbers<[1], [0], [0], [1], [0, 0, 1, 1], [], []>} : vector<16x16xf32>, vector<16x64xf32>, vector<16x64xf32> -> vector<16x64xf32>
    %209 = arith.addf %201, %208 : vector<16x64xf32>
    %c0_173 = arith.constant 0 : index
    %c17_174 = arith.constant 17 : index
    %210 = vector.load %arg17[%c0_173, %c17_174] : memref<16x82xf32, #tpu.memory_space<vmem>>, vector<16x64xf32>
    %c7_175 = arith.constant 7 : index
    %c0_176 = arith.constant 0 : index
    %c0_177 = arith.constant 0 : index
    %211 = vector.load %arg6[%c7_175, %c0_176, %c0_177] : memref<9x16x16xf32, #tpu.memory_space<vmem>>, vector<1x16x16xf32>
    %212 = vector.shape_cast %211 : vector<1x16x16xf32> to vector<16x16xf32>
    %cst_178 = arith.constant dense<0.000000e+00> : vector<16x64xf32>
    %213 = tpu.matmul %212, %210, %cst_178 {dimension_numbers = #tpu.dot_dimension_numbers<[1], [0], [0], [1], [0, 0, 1, 1], [], []>} : vector<16x16xf32>, vector<16x64xf32>, vector<16x64xf32> -> vector<16x64xf32>
    %214 = arith.addf %209, %213 : vector<16x64xf32>
    %c0_179 = arith.constant 0 : index
    %c18_180 = arith.constant 18 : index
    %215 = vector.load %arg17[%c0_179, %c18_180] : memref<16x82xf32, #tpu.memory_space<vmem>>, vector<16x64xf32>
    %216 = vector.extract_strided_slice %1 {offsets = [1, 0], sizes = [1, 64], strides = [1, 1]} : vector<2x64xf32> to vector<1x64xf32>
    %217 = vector.broadcast %216 : vector<1x64xf32> to vector<16x64xf32>
    %218 = arith.mulf %215, %217 : vector<16x64xf32>
    %c8_181 = arith.constant 8 : index
    %c0_182 = arith.constant 0 : index
    %c0_183 = arith.constant 0 : index
    %219 = vector.load %arg6[%c8_181, %c0_182, %c0_183] : memref<9x16x16xf32, #tpu.memory_space<vmem>>, vector<1x16x16xf32>
    %220 = vector.shape_cast %219 : vector<1x16x16xf32> to vector<16x16xf32>
    %cst_184 = arith.constant dense<0.000000e+00> : vector<16x64xf32>
    %221 = tpu.matmul %220, %218, %cst_184 {dimension_numbers = #tpu.dot_dimension_numbers<[1], [0], [0], [1], [0, 0, 1, 1], [], []>} : vector<16x16xf32>, vector<16x64xf32>, vector<16x64xf32> -> vector<16x64xf32>
    %222 = arith.addf %214, %221 : vector<16x64xf32>
    %c0_185 = arith.constant 0 : index
    %c0_186 = arith.constant 0 : index
    %223 = vector.load %arg7[%c0_185, %c0_186] : memref<16x1xf32, #tpu.memory_space<vmem>>, vector<16x1xf32>
    %224 = vector.broadcast %223 : vector<16x1xf32> to vector<16x64xf32>
    %225 = arith.addf %222, %224 : vector<16x64xf32>
    %226 = arith.addf %225, %153 : vector<16x64xf32>
    %cst_187 = arith.constant 0.000000e+00 : f32
    %227 = vector.broadcast %cst_187 : f32 to vector<16x64xf32>
    %228 = arith.maximumf %226, %227 : vector<16x64xf32>
    %c0_188 = arith.constant 0 : index
    %c0_189 = arith.constant 0 : index
    %c0_190 = arith.constant 0 : index
    %229 = vector.load %arg14[%c0_188, %c0_189, %c0_190] : memref<1x16x64xf32, #tpu.memory_space<vmem>>, vector<1x16x64xf32>
    %230 = vector.shape_cast %229 : vector<1x16x64xf32> to vector<16x64xf32>
    %231 = vector.shape_cast %228 : vector<16x64xf32> to vector<1x16x64xf32>
    tpu.vector_store %arg14[%c0_188, %c0_189, %c0_190], %231 {strides = array<i32>} : memref<1x16x64xf32, #tpu.memory_space<vmem>>, vector<1x16x64xf32>,
    %cst_191 = arith.constant dense<0.000000e+00> : vector<16xf32>
    %232 = vector.multi_reduction <add>, %228, %cst_191 [1] : vector<16x64xf32> to vector<16xf32>
    %233 = vector.shape_cast %232 : vector<16xf32> to vector<16x1xf32>
    %cst_192 = arith.constant 1.562500e-02 : f32
    %234 = vector.broadcast %cst_192 : f32 to vector<16x1xf32>
    %235 = arith.mulf %233, %234 : vector<16x1xf32>
    %c0_193 = arith.constant 0 : index
    %c0_194 = arith.constant 0 : index
    %236 = vector.load %arg8[%c0_193, %c0_194] : memref<10x16xf32, #tpu.memory_space<vmem>>, vector<10x16xf32>
    %cst_195 = arith.constant dense<0.000000e+00> : vector<10x1xf32>
    %237 = tpu.matmul %236, %235, %cst_195 {dimension_numbers = #tpu.dot_dimension_numbers<[1], [0], [0], [1], [0, 0, 1, 1], [], []>} : vector<10x16xf32>, vector<16x1xf32>, vector<10x1xf32> -> vector<10x1xf32>
    %c0_196 = arith.constant 0 : index
    %c0_197 = arith.constant 0 : index
    %238 = vector.load %arg9[%c0_196, %c0_197] : memref<10x1xf32, #tpu.memory_space<vmem>>, vector<10x1xf32>
    %239 = arith.addf %237, %238 : vector<10x1xf32>
    %240 = math.tanh %239 : vector<10x1xf32>
    %c0_198 = arith.constant 0 : index
    %c0_199 = arith.constant 0 : index
    %c0_200 = arith.constant 0 : index
    %241 = vector.load %arg13[%c0_198, %c0_199, %c0_200] : memref<1x10x1xf32, #tpu.memory_space<vmem>>, vector<1x10x1xf32>
    %242 = vector.shape_cast %241 : vector<1x10x1xf32> to vector<10x1xf32>
    %243 = vector.shape_cast %240 : vector<10x1xf32> to vector<1x10x1xf32>
    tpu.vector_store %arg13[%c0_198, %c0_199, %c0_200], %243 {strides = array<i32>} : memref<1x10x1xf32, #tpu.memory_space<vmem>>, vector<1x10x1xf32>,
    return
  }
  func.func @transform_0(%arg0: i32) -> (i32, i32, i32) {
    %c0_i32 = arith.constant 0 : i32
    %c0_i32_0 = arith.constant 0 : i32
    %c0_i32_1 = arith.constant 0 : i32
    return %arg0, %c0_i32, %c0_i32_0 : i32, i32, i32
  }
  func.func @transform_1(%arg0: i32) -> (i32, i32, i32) {
    %c0_i32 = arith.constant 0 : i32
    %c0_i32_0 = arith.constant 0 : i32
    %c0_i32_1 = arith.constant 0 : i32
    %c0_i32_2 = arith.constant 0 : i32
    return %c0_i32, %c0_i32_0, %c0_i32_1 : i32, i32, i32
  }
  func.func @transform_2(%arg0: i32) -> (i32, i32) {
    %c0_i32 = arith.constant 0 : i32
    %c0_i32_0 = arith.constant 0 : i32
    %c0_i32_1 = arith.constant 0 : i32
    return %c0_i32, %c0_i32_0 : i32, i32
  }
  func.func @transform_3(%arg0: i32) -> (i32, i32, i32) {
    %c0_i32 = arith.constant 0 : i32
    %c0_i32_0 = arith.constant 0 : i32
    %c0_i32_1 = arith.constant 0 : i32
    %c0_i32_2 = arith.constant 0 : i32
    return %c0_i32, %c0_i32_0, %c0_i32_1 : i32, i32, i32
  }
  func.func @transform_4(%arg0: i32) -> (i32, i32) {
    %c0_i32 = arith.constant 0 : i32
    %c0_i32_0 = arith.constant 0 : i32
    %c0_i32_1 = arith.constant 0 : i32
    return %c0_i32, %c0_i32_0 : i32, i32
  }
  func.func @transform_5(%arg0: i32) -> (i32, i32, i32) {
    %c0_i32 = arith.constant 0 : i32
    %c0_i32_0 = arith.constant 0 : i32
    %c0_i32_1 = arith.constant 0 : i32
    %c0_i32_2 = arith.constant 0 : i32
    return %c0_i32, %c0_i32_0, %c0_i32_1 : i32, i32, i32
  }
  func.func @transform_6(%arg0: i32) -> (i32, i32) {
    %c0_i32 = arith.constant 0 : i32
    %c0_i32_0 = arith.constant 0 : i32
    %c0_i32_1 = arith.constant 0 : i32
    return %c0_i32, %c0_i32_0 : i32, i32
  }
  func.func @transform_7(%arg0: i32) -> (i32, i32) {
    %c0_i32 = arith.constant 0 : i32
    %c0_i32_0 = arith.constant 0 : i32
    %c0_i32_1 = arith.constant 0 : i32
    return %c0_i32, %c0_i32_0 : i32, i32
  }
  func.func @transform_8(%arg0: i32) -> (i32, i32) {
    %c0_i32 = arith.constant 0 : i32
    %c0_i32_0 = arith.constant 0 : i32
    %c0_i32_1 = arith.constant 0 : i32
    return %c0_i32, %c0_i32_0 : i32, i32
  }
  func.func @transform_9(%arg0: i32) -> (i32, i32) {
    %c0_i32 = arith.constant 0 : i32
    %c0_i32_0 = arith.constant 0 : i32
    %c0_i32_1 = arith.constant 0 : i32
    return %c0_i32, %c0_i32_0 : i32, i32
  }
  func.func @transform_10(%arg0: i32) -> (i32, i32) {
    %c0_i32 = arith.constant 0 : i32
    %c0_i32_0 = arith.constant 0 : i32
    %c0_i32_1 = arith.constant 0 : i32
    return %c0_i32, %c0_i32_0 : i32, i32
  }
  func.func @transform_11(%arg0: i32) -> (i32, i32) {
    %c0_i32 = arith.constant 0 : i32
    %c0_i32_0 = arith.constant 0 : i32
    %c0_i32_1 = arith.constant 0 : i32
    return %c0_i32, %c0_i32_0 : i32, i32
  }
  func.func @transform_12(%arg0: i32) -> (i32, i32, i32) {
    %c0_i32 = arith.constant 0 : i32
    %c0_i32_0 = arith.constant 0 : i32
    %c0_i32_1 = arith.constant 0 : i32
    return %arg0, %c0_i32, %c0_i32_0 : i32, i32, i32
  }
  func.func @transform_13(%arg0: i32) -> (i32, i32, i32) {
    %c0_i32 = arith.constant 0 : i32
    %c0_i32_0 = arith.constant 0 : i32
    %c0_i32_1 = arith.constant 0 : i32
    return %arg0, %c0_i32, %c0_i32_0 : i32, i32, i32
  }
}

</mosaic_0001>

<bundles_post_ra>
// kernel: net_forward.1
= control target key start
LH: loop header
LB: loop body
LE: loop exit
PB: predicated region body
PF: predicated region fallthrough
CT: control target
= control target key end

     0   :  { %19 = vsyncpa [#allocation6], 0  ;;  %s2971_s25 = smov 0   ;;  %s3603_s0 = inlined_call_operand.vmem [shape: f32[2,4,256], index: 0, kind: input, shape index: {}]   ;;  %s3604_s1 = inlined_call_operand.vmem [shape: f32[9,8,4], index: 1, kind: input, shape index: {}]   ;;  %s3605_s2 = inlined_call_operand.vmem [shape: f32[8,1], index: 2, kind: input, shape index: {}]   ;;  %s3606_s3 = inlined_call_operand.vmem [shape: f32[9,16,8], index: 3, kind: input, shape index: {}]   ;;  %s3607_s4 = inlined_call_operand.vmem [shape: f32[16,1], index: 4, kind: input, shape index: {}]   ;;  %s3608_s5 = inlined_call_operand.vmem [shape: f32[9,16,16], index: 5, kind: input, shape index: {}]   ;;  %s3609_s6 = inlined_call_operand.vmem [shape: f32[16,1], index: 6, kind: input, shape index: {}]   ;;  %s3610_s7 = inlined_call_operand.hbm [shape: f32[10,16], index: 7, kind: input, shape index: {}]   ;;  %s3611_s8 = inlined_call_operand.vmem [shape: f32[10,1], index: 8, kind: input, shape index: {}]   ;;  %s3612_s9 = inlined_call_operand.vmem [shape: f32[2,256], index: 9, kind: input, shape index: {}]   ;;  %s3613_s10 = inlined_call_operand.vmem [shape: f32[2,64], index: 10, kind: input, shape index: {}]   ;;  %s3614_s11 = inlined_call_operand.vmem [shape: f32[256,64], index: 11, kind: input, shape index: {}]   ;;  %s3615_s12 = inlined_call_operand.vmem [shape: f32[2,10,1], index: 12, kind: output, shape index: {0}]   ;;  %s3616_s13 = inlined_call_operand.vmem [shape: f32[2,16,64], index: 13, kind: output, shape index: {1}]  }
   0x1 LB: > { %s368_s28 = sshll.u32 %s3610_s7, 4  ;;  %s2554_s29 = sadd.s32 4294967295, %s2874_s25   ;;  %s2874_s25 = sphi %s2971_s25, %s25_s25   ;;  %s369_s28 = int_to_ptr.hbm [resolvable:$true] %s368_s28 }
   0x2   : > { %p2556_p0 = scmp.ge.s32.totalorder %s2874_s25, 1  ;;  %p339_p1 = scmp.lt.s32.totalorder %s2874_s25, 3 }
   0x3   : > { %p2712_p2 = scmp.eq.s32.totalorder %s2554_s29, 0  ;;  %s2876_s30 = smov [#allocation5]  }
   0x4   : > { %p340_p3 = pnand %p2556_p0, %p339_p1  ;;  %s370_s14 = sshll.u32 %s2876_s30, 4  ;;  %s371_s14 = int_to_ptr.vmem [resolvable:$true] %s370_s14 }
   0x5   : > { %s2877_s15 = smov 128   ;;  %s2878_s16 = smov 8  }
   0x6   : > { %p2708_p4 = pneg %p340_p3  ;;  %406 = sbr.rel (%p340_p3) target bundleno = 1779 (0x6f3), region = 68 }
   0x8   : > { %p2709_p5 = pnand %p2712_p2, %p2708_p4 }
   0xa   : > { %2711 = dma.hbm_to_vmem [thread:$0]  (!%p2709_p5), %s369_s28, 256, %s371_s14, [#allocation6], %s2877_s15, %s2877_s15, %s2878_s16  }
   0xb   : > { %2869 = dma.done.wait (%p2712_p2), [#allocation6], 256  }
   0xc   : > { %2871 = vsyncadd (%p2712_p2), [#allocation6], 4294967040  ;;  %p456_p6 = scmp.lt.s32.totalorder %s2554_s29, 1  ;;  %vm474_vm0 = vcmask 134144   ;;  %vm476_vm1 = vcmask 273544   ;;  %v2879_v0 = vmov 0.0  }
   0xd   : > { %475 = vst.msk [vmem:[#allocation2] sm:$0xf] %vm474_vm0, %v2879_v0  ;;  %vm482_vm2 = vcmask 138240   ;;  %v471_v2 = vld [vmem:[%s3612_s9] sm:$0xf]  ;;  %s2880_s23 = smov 17  }
   0xe   : > { %s3633_s29 = smov (!%p456_p6, %s2554_s29), 1  ;;  %477 = vst.msk [vmem:[#allocation2 + $0x8] sm:$0xf] %vm476_vm1, %v2879_v0  ;;  %v493_v3 = vperm.slane %v471_v2, 0  ;;  %v494_v4 = vperm.slane %v471_v2, 2  ;;  %v628_v5 = vperm.slane %v471_v2, 1 }
   0xf   : > { %s2701_s17 = sshll.u32 %s3633_s29, 3  ;;  %1181 = vst.msk [vmem:[#allocation3] sm:$0xff] %vm482_vm2, %v2879_v0  ;;  %v629_v6 = vperm.slane %v471_v2, 3  ;;  %vm502_vm3 = vcmask 1043456   ;;  %s2881_s24 = smov 16   ;;  %vm486_vm4 = vcmask 1043592  }
  0x10   : > { %s460_s20 = scalar_lea.vmem %s3603_s0, %s2701_s17  ;;  %v2997_v7 = vperm.slane %v493_v3, 0  ;;  %v2999_v8 = vperm.slane %v494_v4, 0  ;;  %v3001_v9 = vperm.slane %v628_v5, 1  ;;  %s2882_s26 = smov 32   ;;  %vm487_vm5 = vcmask 1047556  }
  0x11   : > { %v473_v1 = vld [vmem:[%s460_s20] sm:$0xff]  ;;  %v3003_v10 = vperm.slane %v629_v6, 1  ;;  %s2883_s27 = smov 2   ;;  %s2884_s28 = smov 18   ;;  %vm488_vm6 = vmor %vm487_vm5, %vm486_vm4  ;;  %vm641_vm7 = vcmask 15360   ;;  %vm720_vm8 = vcmask 130048  }
  0x12   : > { %479 = vrot.lane.b32.xlu0 %v473_v1, %s2880_s23  ;;  %v501_v11 = vrot.slane %v2999_v8, 4  ;;  %s2885_s30 = smov 34   ;;  %s2886_s14 = smov 127   ;;  %vm869_vm9 = vcmask 146432   ;;  %vm948_vm10 = vcmask 261120   ;;  %vm1097_vm11 = vcmask 277504  }
  0x13   : > { %v636_v12 = vrot.slane %v3003_v10, 4  ;;  %s3625_s15 = smov 126   ;;  %s3624_s16 = smov 112   ;;  %vm527_vm12 = vcmask 31744   ;;  %vm524_vm13 = vcmask 1039360   ;;  %vm663_vm14 = vcmask 1031168  }
  0x14   : > { %v503_v13 = vsel %vm502_vm3, %v2997_v7, %v501_v11  ;;  %s3623_s17 = smov 111   ;;  %s3617_s18 = smov 110   ;;  %vm742_vm15 = vcmask 916480   ;;  %vm891_vm1 = vcmask 900096   ;;  %vm970_vm4 = vcmask 785408  }
  0x15   : > { %v637_v14 = vsel %vm502_vm3, %v3001_v9, %v636_v12  ;;  %717 = vrot.lane.b32.xlu1 %v503_v13, %s2881_s24  ;;  %945 = vrot.lane.b32.xlu2 %v503_v13, %s2882_s26  ;;  %s3621_s19 = smov 96   ;;  %s3619_s20 = smov 95   ;;  %vm1040_vm5 = vcmask 777216  }
  0x16   : > { %s2893_s21 = smov 94   ;;  %s3626_s22 = smov 96  }
  0x1a   : > { %638 = vrot.lane.b32.xlu0 %v637_v14, %s2883_s27 }
  0x1d   : > { %866 = vrot.lane.b32.xlu1 %v637_v14, %s2884_s28  ;;  %1094 = vrot.lane.b32.xlu2 %v637_v14, %s2885_s30 }
  0x6f   : > { %v946_v50 = vpop.permute.xlu2 %945 }
  0x70   : > { %v947_v51 = vrot.slane %v946_v50, 4 }
  0x72   : > { %v949_v59 = vsel %vm948_vm10, %v947_v51, %v946_v50  ;;  %v2591_v50 = vld [vmem:[%s3604_s1 + $0x28] sm:$0xff] }
  0x77   : > { %v1095_v1 = vpop.permute.xlu2 %1094 }
  0x78   : > { %v1096_v3 = vrot.slane %v1095_v1, 4 }
  0x84   : > { %v480_v15 = vpop.permute.xlu0 %479 }
  0x85   : > { %v481_v16 = vrot.slane %v480_v15, 4 }
  0x87   : > { %v483_v17 = vsel %vm482_vm2, %v481_v16, %v480_v15  ;;  %490 = vst.msk [vmem:[#allocation2 + $0x8] sm:$0xf] %vm474_vm0, %v481_v16  ;;  %v718_v27 = vpop.permute.xlu1 %717  ;;  %vm812_vm0 = vcmask 908288  }
  0x88   : > { %489 = vst.msk [vmem:[#allocation2] sm:$0xff] %vm488_vm6, %v483_v17  ;;  %v719_v29 = vrot.slane %v718_v27, 4  ;;  %vm1119_vm6 = vcmask 769024  }
  0x8a   : > { %v721_v37 = vsel %vm720_vm8, %v719_v29, %v718_v27 }
  0x8c   : > { %v639_v20 = vpop.permute.xlu0 %638 }
  0x8d   : > { %v640_v21 = vrot.slane %v639_v20, 4 }
  0x8e   : > { %v507_v19 = vld [vmem:[#allocation2 + $0x8] sm:$0xf] }
  0x8f   : > { %v3018_v18 = vld [vmem:[#allocation2] sm:$0xff]  ;;  %514 = vst [vmem:[#allocation1 + $0x10] ss:$2 sm:$0xff] %v507_v19  ;;  %v627_v22 = vld [vmem:[#allocation2 + $0x8] sm:$0xf]  ;;  %v642_v30 = vsel %vm641_vm7, %v640_v21, %v639_v20  ;;  %v867_v42 = vpop.permute.xlu1 %866 }
  0x90   : > { %512 = vst [vmem:[#allocation1] ss:$2 sm:$0xff] %v3018_v18  ;;  %v505_v23 = vmul.f32 %v503_v13, %v3018_v18  ;;  %v646_v24 = vmul.f32 %v640_v21, %v627_v22  ;;  %v716_v31 = vld [vmem:[#allocation2 + $0x8] sm:$0xf]  ;;  %v645_v32 = vmul.f32 %v642_v30, %v3018_v18  ;;  %v724_v38 = vmul.f32 %v721_v37, %v3018_v18  ;;  %v2581_v37 = vld [vmem:[%s3604_s1 + $0x18] sm:$0xff] }
  0x91   : > { %v725_v33 = vmul.f32 %v719_v29, %v716_v31  ;;  %v795_v39 = vld [vmem:[#allocation2 + $0x8] sm:$0xf]  ;;  %v868_v44 = vrot.slane %v867_v42, 4  ;;  %v952_v61 = vmul.f32 %v949_v59, %v3018_v18  ;;  %v1098_v13 = vsel %vm1097_vm11, %v1096_v3, %v1095_v1 }
  0x92   : > { %v865_v45 = vld [vmem:[#allocation2 + $0x8] sm:$0xf]  ;;  %v1101_v14 = vmul.f32 %v1098_v13, %v3018_v18 }
  0x93   : > { %v874_v46 = vmul.f32 %v868_v44, %v865_v45  ;;  %v870_v52 = vsel %vm869_vm9, %v868_v44, %v867_v42  ;;  %v944_v53 = vld [vmem:[#allocation2 + $0x8] sm:$0xf]  ;;  %v2586_v42 = vld [vmem:[%s3604_s1 + $0x20] sm:$0xff] }
  0x94   : > { %v873_v54 = vmul.f32 %v870_v52, %v3018_v18  ;;  %v953_v55 = vmul.f32 %v947_v51, %v944_v53  ;;  %v1023_v60 = vld [vmem:[#allocation2 + $0x8] sm:$0xf] }
  0x95   : > { %v1093_v4 = vld [vmem:[#allocation2 + $0x8] sm:$0xf] }
  0x96   : > { %v517_v28 = vld.sshfl [vmem:[#allocation1 + $0x10] sm:$0xff pattern:$0x75316420]  ;;  %v1102_v5 = vmul.f32 %v1096_v3, %v1093_v4 }
  0x97   : > { %v515_v25 = vld.sshfl [vmem:[#allocation1] sm:$0xff pattern:$0x75316420]  ;;  %v516_v26 = vld.sshfl [vmem:[#allocation1 + $0x8] sm:$0xff pattern:$0x75316420]  ;;  %522 = vrot.lane.b32.xlu2 %v517_v28, %s2886_s14 }
  0x98   : > { %518 = vrot.lane.b32.xlu0 %v515_v25, %s2886_s14  ;;  %520 = vrot.lane.b32.xlu1 %v516_v26, %s2886_s14  ;;  %576 = vst [vmem:[#allocation1] ss:$2 sm:$0xff] %v505_v23  ;;  %v2576_v31 = vld [vmem:[%s3604_s1 + $0x10] sm:$0xff] }
  0x99   : > { %653 = vst [vmem:[#allocation1 + $0x10] ss:$2 sm:$0xff] %v646_v24  ;;  %v2567_v24 = vld [vmem:[%s3604_s1 + $0x8] sm:$0xff] }
  0x9f   : > { %v577_v34 = vld.sshfl [vmem:[#allocation1] sm:$0xff pattern:$0x75316420]  ;;  %v578_v35 = vld.sshfl [vmem:[#allocation1 + $0x8] sm:$0xff pattern:$0x75316420] }
  0xa0   : > { %v656_v36 = vld.sshfl [vmem:[#allocation1 + $0x10] sm:$0xff pattern:$0x75316420]  ;;  %2572 = vmatpush.msk.msra.mxu2 %vm502_vm3, %v577_v34  ;;  %2574 = vmatpush.msk.msra.mxu3 %vm502_vm3, %v578_v35  ;;  %651 = vst [vmem:[#allocation1] ss:$2 sm:$0xff] %v645_v32 }
  0xa1   : > { %661 = vrot.lane.b32.xlu2 %v656_v36, %s3625_s15  ;;  %732 = vst [vmem:[#allocation1 + $0x10] ss:$2 sm:$0xff] %v725_v33 }
  0xa7   : > { %v655_v40 = vld.sshfl [vmem:[#allocation1 + $0x8] sm:$0xff pattern:$0x75316420]  ;;  %v654_v41 = vld.sshfl [vmem:[#allocation1] sm:$0xff pattern:$0x75316420] }
  0xa8   : > { %v735_v43 = vld.sshfl [vmem:[#allocation1 + $0x10] sm:$0xff pattern:$0x75316420]  ;;  %659 = vrot.lane.b32.xlu1 %v655_v40, %s3625_s15  ;;  %657 = vrot.lane.b32.xlu0 %v654_v41, %s3625_s15  ;;  %730 = vst [vmem:[#allocation1] ss:$2 sm:$0xff] %v724_v38 }
  0xa9   : > { %740 = vrot.lane.b32.xlu2 %v735_v43, %s3624_s16  ;;  %802 = vst [vmem:[#allocation1 + $0x10] ss:$2 sm:$0xff] %v795_v39 }
  0xaf   : > { %v734_v47 = vld.sshfl [vmem:[#allocation1 + $0x8] sm:$0xff pattern:$0x75316420]  ;;  %v733_v48 = vld.sshfl [vmem:[#allocation1] sm:$0xff pattern:$0x75316420] }
  0xb0   : > { %v805_v49 = vld.sshfl [vmem:[#allocation1 + $0x10] sm:$0xff pattern:$0x75316420]  ;;  %738 = vrot.lane.b32.xlu1 %v734_v47, %s3624_s16  ;;  %736 = vrot.lane.b32.xlu0 %v733_v48, %s3624_s16  ;;  %800 = vst [vmem:[#allocation1] ss:$2 sm:$0xff] %v3018_v18  ;;  %v2894_v47 = vmov 0  }
  0xb1   : > { %810 = vrot.lane.b32.xlu2 %v805_v49, %s3623_s17  ;;  %881 = vst [vmem:[#allocation1 + $0x10] ss:$2 sm:$0xff] %v874_v46  ;;  %v1171_v46 = vld [vmem:[%s3605_s2] sm:$0xff]  ;;  %2747 = vset.pattern.permute.xlu0 %v2894_v47 }
  0xb2   : > { %2788 = vset.pattern.permute.xlu1 %v2894_v47  ;;  %2829 = vset.pattern.permute.xlu2 %v2894_v47 }
  0xb7   : > { %v804_v56 = vld.sshfl [vmem:[#allocation1 + $0x8] sm:$0xff pattern:$0x75316420]  ;;  %v803_v57 = vld.sshfl [vmem:[#allocation1] sm:$0xff pattern:$0x75316420] }
  0xb8   : > { %v884_v58 = vld.sshfl [vmem:[#allocation1 + $0x10] sm:$0xff pattern:$0x75316420]  ;;  %808 = vrot.lane.b32.xlu1 %v804_v56, %s3623_s17  ;;  %806 = vrot.lane.b32.xlu0 %v803_v57, %s3623_s17  ;;  %879 = vst [vmem:[#allocation1] ss:$2 sm:$0xff] %v873_v54 }
  0xb9   : > { %889 = vrot.lane.b32.xlu2 %v884_v58, %s3617_s18  ;;  %960 = vst [vmem:[#allocation1 + $0x10] ss:$2 sm:$0xff] %v953_v55  ;;  %v2596_v56 = vld [vmem:[%s3604_s1 + $0x30] sm:$0xff] }
  0xbf   : > { %v883_v62 = vld.sshfl [vmem:[#allocation1 + $0x8] sm:$0xff pattern:$0x75316420]  ;;  %v882_v63 = vld.sshfl [vmem:[#allocation1] sm:$0xff pattern:$0x75316420] }
  0xc0   : > { %v963_v2 = vld.sshfl [vmem:[#allocation1 + $0x10] sm:$0xff pattern:$0x75316420]  ;;  %887 = vrot.lane.b32.xlu1 %v883_v62, %s3617_s18  ;;  %885 = vrot.lane.b32.xlu0 %v882_v63, %s3617_s18  ;;  %958 = vst [vmem:[#allocation1] ss:$2 sm:$0xff] %v952_v61  ;;  %v2601_v62 = vld [vmem:[%s3604_s1 + $0x38] sm:$0xff] }
  0xc1   : > { %968 = vrot.lane.b32.xlu2 %v963_v2, %s3621_s19  ;;  %1030 = vst [vmem:[#allocation1 + $0x10] ss:$2 sm:$0xff] %v1023_v60 }
  0xc7   : > { %v962_v6 = vld.sshfl [vmem:[#allocation1 + $0x8] sm:$0xff pattern:$0x75316420]  ;;  %v961_v11 = vld.sshfl [vmem:[#allocation1] sm:$0xff pattern:$0x75316420] }
  0xc8   : > { %v1033_v12 = vld.sshfl [vmem:[#allocation1 + $0x10] sm:$0xff pattern:$0x75316420]  ;;  %966 = vrot.lane.b32.xlu1 %v962_v6, %s3621_s19  ;;  %964 = vrot.lane.b32.xlu0 %v961_v11, %s3621_s19  ;;  %1028 = vst [vmem:[#allocation1] ss:$2 sm:$0xff] %v3018_v18  ;;  %v506_v18 = vld [vmem:[%s3604_s1] sm:$0xff] }
  0xc9   : > { %1038 = vrot.lane.b32.xlu2 %v1033_v12, %s3619_s20  ;;  %1109 = vst [vmem:[#allocation1 + $0x10] ss:$2 sm:$0xff] %v1102_v5  ;;  %2573 = vmatmul.msk.f32.vlgmr.msra.gmra.mxu2 %vm527_vm12, %v506_v18  ;;  %v2606_v5 = vld [vmem:[%s3604_s1 + $0x40] sm:$0xff] }
  0xca   : > { %2575 = vmatmul.msk.f32.vlgmr.msra.gmra.mxu3 %vm527_vm12, %v506_v18 }
  0xcf   : > { %v1032_v15 = vld.sshfl [vmem:[#allocation1 + $0x8] sm:$0xff pattern:$0x75316420]  ;;  %v1031_v16 = vld.sshfl [vmem:[#allocation1] sm:$0xff pattern:$0x75316420] }
  0xd0   : > { %v1112_v17 = vld.sshfl [vmem:[#allocation1 + $0x10] sm:$0xff pattern:$0x75316420]  ;;  %1036 = vrot.lane.b32.xlu1 %v1032_v15, %s3619_s20  ;;  %1034 = vrot.lane.b32.xlu0 %v1031_v16, %s3619_s20  ;;  %1107 = vst [vmem:[#allocation1] ss:$2 sm:$0xff] %v1101_v14  ;;  %s2895_s20 = smov 10  }
  0xd1   : > { %1117 = vrot.lane.b32.xlu2 %v1112_v17, %s2893_s21 }
  0xd7   : > { %v1111_v19 = vld.sshfl [vmem:[#allocation1 + $0x8] sm:$0xff pattern:$0x75316420]  ;;  %v1110_v20 = vld.sshfl [vmem:[#allocation1] sm:$0xff pattern:$0x75316420] }
  0xd8   : > { %1115 = vrot.lane.b32.xlu1 %v1111_v19, %s2893_s21  ;;  %1113 = vrot.lane.b32.xlu0 %v1110_v20, %s2893_s21 }
  0xe0   : > { %1174 = vperm.xlu0 %2747, %v1171_v46  }
  0xe8   : > { %1409 = vrot.lane.b32.xlu0 %v2997_v7, %s2881_s24 }
  0xf1   : > { %v523_v21 = vpop.permute.xlu2 %522 }
  0xfb   : > { %v662_v27 = vpop.permute.xlu2 %661 }
 0x103   : > { %v741_v28 = vpop.permute.xlu2 %740 }
 0x10a   : > { %v519_v22 = vpop.permute.xlu0 %518  ;;  %v521_v23 = vpop.permute.xlu1 %520 }
 0x10b   : > { %v525_v25 = vsel %vm524_vm13, %v519_v22, %v521_v23  ;;  %v526_v26 = vsel %vm524_vm13, %v521_v23, %v523_v21  ;;  %v811_v34 = vpop.permute.xlu2 %810 }
 0x10c   : > { %2568 = vmatpush.msk.msra.mxu0 %vm502_vm3, %v525_v25  ;;  %2570 = vmatpush.msk.msra.mxu1 %vm502_vm3, %v526_v26 }
 0x10d   : > { %2569 = vmatmul.msk.f32.vlgmr.msra.gmra.mxu0 %vm527_vm12, %v2567_v24  ;;  %2571 = vmatmul.msk.f32.vlgmr.msra.gmra.mxu1 %vm527_vm12, %v2567_v24 }
 0x113   : > { %v890_v43 = vpop.permute.xlu2 %889 }
 0x11a   : > { %v660_v29 = vpop.permute.xlu1 %659  ;;  %v658_v30 = vpop.permute.xlu0 %657 }
 0x11b   : > { %v664_v32 = vsel %vm663_vm14, %v658_v30, %v660_v29  ;;  %v665_v33 = vsel %vm663_vm14, %v660_v29, %v662_v27  ;;  %v969_v53 = vpop.permute.xlu2 %968 }
 0x11c   : > { %2577 = vmatpush.msk.msrb.mxu0 %vm502_vm3, %v664_v32  ;;  %2579 = vmatpush.msk.msrb.mxu1 %vm502_vm3, %v665_v33 }
 0x11d   : > { %2578 = vmatmul.msk.f32.vlgmr.msrb.gmra.mxu0 %vm527_vm12, %v2576_v31  ;;  %2580 = vmatmul.msk.f32.vlgmr.msrb.gmra.mxu1 %vm527_vm12, %v2576_v31 }
 0x122   : > { %v739_v35 = vpop.permute.xlu1 %738  ;;  %v737_v36 = vpop.permute.xlu0 %736 }
 0x123   : > { %v743_v38 = vsel %vm742_vm15, %v737_v36, %v739_v35  ;;  %v744_v39 = vsel %vm742_vm15, %v739_v35, %v741_v28  ;;  %v1039_v59 = vpop.permute.xlu2 %1038 }
 0x124   : > { %2582 = vmatpush.msk.msrb.mxu2 %vm502_vm3, %v743_v38  ;;  %2584 = vmatpush.msk.msrb.mxu3 %vm502_vm3, %v744_v39 }
 0x125   : > { %2583 = vmatmul.msk.f32.vlgmr.msrb.gmra.mxu2 %vm527_vm12, %v2581_v37  ;;  %2585 = vmatmul.msk.f32.vlgmr.msrb.gmra.mxu3 %vm527_vm12, %v2581_v37 }
 0x12a   : > { %v809_v40 = vpop.permute.xlu1 %808  ;;  %v807_v41 = vpop.permute.xlu0 %806 }
 0x12b   : > { %v814_v44 = vsel %vm812_vm0, %v809_v40, %v811_v34  ;;  %v813_v45 = vsel %vm812_vm0, %v807_v41, %v809_v40  ;;  %v1118_v2 = vpop.permute.xlu2 %1117 }
 0x12c   : > { %2587 = vmatpush.msk.msra.mxu0 %vm502_vm3, %v813_v45  ;;  %2589 = vmatpush.msk.msra.mxu1 %vm502_vm3, %v814_v44 }
 0x12d   : > { %2588 = vmatmul.msk.f32.vlgmr.msra.gmra.mxu0 %vm527_vm12, %v2586_v42  ;;  %2590 = vmatmul.msk.f32.vlgmr.msra.gmra.mxu1 %vm527_vm12, %v2586_v42 }
 0x132   : > { %v888_v48 = vpop.permute.xlu1 %887  ;;  %v886_v49 = vpop.permute.xlu0 %885 }
 0x133   : > { %v893_v51 = vsel %vm891_vm1, %v888_v48, %v890_v43  ;;  %v892_v52 = vsel %vm891_vm1, %v886_v49, %v888_v48 }
 0x134   : > { %2592 = vmatpush.msk.msra.mxu2 %vm502_vm3, %v892_v52  ;;  %2594 = vmatpush.msk.msra.mxu3 %vm502_vm3, %v893_v51 }
 0x135   : > { %2593 = vmatmul.msk.f32.vlgmr.msra.gmra.mxu2 %vm527_vm12, %v2591_v50  ;;  %2595 = vmatmul.msk.f32.vlgmr.msra.gmra.mxu3 %vm527_vm12, %v2591_v50 }
 0x13a   : > { %v967_v54 = vpop.permute.xlu1 %966  ;;  %v965_v55 = vpop.permute.xlu0 %964 }
 0x13b   : > { %v972_v57 = vsel %vm970_vm4, %v967_v54, %v969_v53  ;;  %v971_v58 = vsel %vm970_vm4, %v965_v55, %v967_v54 }
 0x13c   : > { %2597 = vmatpush.msk.msrb.mxu0 %vm502_vm3, %v971_v58  ;;  %2599 = vmatpush.msk.msrb.mxu1 %vm502_vm3, %v972_v57 }
 0x13d   : > { %2598 = vmatmul.msk.f32.vlgmr.msrb.gmra.mxu0 %vm527_vm12, %v2596_v56  ;;  %2600 = vmatmul.msk.f32.vlgmr.msrb.gmra.mxu1 %vm527_vm12, %v2596_v56 }
 0x142   : > { %v1037_v60 = vpop.permute.xlu1 %1036  ;;  %v1035_v61 = vpop.permute.xlu0 %1034 }
 0x143   : > { %v1042_v63 = vsel %vm1040_vm5, %v1037_v60, %v1039_v59  ;;  %v1041_v1 = vsel %vm1040_vm5, %v1035_v61, %v1037_v60 }
 0x144   : > { %2602 = vmatpush.msk.msrb.mxu2 %vm502_vm3, %v1041_v1  ;;  %2604 = vmatpush.msk.msrb.mxu3 %vm502_vm3, %v1042_v63 }
 0x145   : > { %2603 = vmatmul.msk.f32.vlgmr.msrb.gmra.mxu2 %vm527_vm12, %v2601_v62  ;;  %2605 = vmatmul.msk.f32.vlgmr.msrb.gmra.mxu3 %vm527_vm12, %v2601_v62 }
 0x14a   : > { %v1116_v3 = vpop.permute.xlu1 %1115  ;;  %v1114_v4 = vpop.permute.xlu0 %1113 }
 0x14b   : > { %v1121_v6 = vsel %vm1119_vm6, %v1116_v3, %v1118_v2  ;;  %v1120_v11 = vsel %vm1119_vm6, %v1114_v4, %v1116_v3 }
 0x14c   : > { %2607 = vmatpush.msk.msra.mxu0 %vm502_vm3, %v1120_v11  ;;  %2609 = vmatpush.msk.msra.mxu1 %vm502_vm3, %v1121_v6  ;;  %v603_v15 = vpop.f32.mrf.mxu2  ;;  %vm1182_vm3 = vcmask 277640  }
 0x14d   : > { %2608 = vmatmul.msk.f32.vlgmr.msra.gmra.mxu0 %vm527_vm12, %v2606_v5  ;;  %2610 = vmatmul.msk.f32.vlgmr.msra.gmra.mxu1 %vm527_vm12, %v2606_v5  ;;  %v623_v14 = vpop.f32.mrf.mxu3  ;;  %1183 = vst.msk [vmem:[#allocation3 + $0x10] sm:$0xff] %vm1182_vm3, %v2879_v0  ;;  %vm1194_vm12 = vcmask 1047688  }
 0x152   : > { %v1175_v42 = vpop.permute.xlu0 %1174 }
 0x15a   : > { %v1410_v3 = vpop.permute.xlu0 %1409 }
 0x18a   : > { %v572_v12 = vpop.f32.mrf.mxu1  ;;  %v552_v13 = vpop.f32.mrf.mxu0 }
 0x18b   : > { %v624_v19 = vadd.f32 %v623_v14, %v572_v12  ;;  %v604_v20 = vadd.f32 %v603_v15, %v552_v13 }
 0x19a   : > { %v710_v16 = vpop.f32.mrf.mxu1  ;;  %v690_v17 = vpop.f32.mrf.mxu0 }
 0x19b   : > { %v714_v18 = vadd.f32 %v710_v16, %v624_v19  ;;  %v713_v24 = vadd.f32 %v690_v17, %v604_v20  ;;  %v2611_v16 = vld [vmem:[%s3606_s3 + $0x10] sm:$0xff] }
 0x1a8   : > { %v789_v21 = vpop.f32.mrf.mxu3  ;;  %v769_v22 = vpop.f32.mrf.mxu2 }
 0x1a9   : > { %v793_v26 = vadd.f32 %v789_v21, %v714_v18  ;;  %v792_v27 = vadd.f32 %v769_v22, %v713_v24  ;;  %v1202_v22 = vld [vmem:[%s3606_s3] sm:$0xff] }
 0x1aa   : > { %v859_v23 = vpop.f32.mrf.mxu1  ;;  %v839_v25 = vpop.f32.mrf.mxu0 }
 0x1ab   : > { %v863_v28 = vadd.f32 %v859_v23, %v793_v26  ;;  %v862_v31 = vadd.f32 %v839_v25, %v792_v27 }
 0x1b8   : > { %v918_v29 = vpop.f32.mrf.mxu2  ;;  %v938_v30 = vpop.f32.mrf.mxu3 }
 0x1b9   : > { %v941_v34 = vadd.f32 %v918_v29, %v862_v31  ;;  %v942_v35 = vadd.f32 %v938_v30, %v863_v28  ;;  %v2612_v30 = vld [vmem:[%s3606_s3 + $0x18] sm:$0xff] }
 0x1ba   : > { %v997_v32 = vpop.f32.mrf.mxu0  ;;  %v1017_v33 = vpop.f32.mrf.mxu1 }
 0x1bb   : > { %v1020_v36 = vadd.f32 %v997_v32, %v941_v34  ;;  %v1021_v37 = vadd.f32 %v1017_v33, %v942_v35  ;;  %v1203_v32 = vld [vmem:[%s3606_s3 + $0x8] sm:$0xff] }
 0x1c8   : > { %v1067_v38 = vpop.f32.mrf.mxu2  ;;  %v1087_v39 = vpop.f32.mrf.mxu3 }
 0x1c9   : > { %v1090_v40 = vadd.f32 %v1067_v38, %v1020_v36  ;;  %v1091_v41 = vadd.f32 %v1087_v39, %v1021_v37  ;;  %v2621_v38 = vld [vmem:[%s3606_s3 + $0x20] sm:$0xff] }
 0x1ca   : > { %v1146_v43 = vpop.f32.mrf.mxu0  ;;  %v1166_v44 = vpop.f32.mrf.mxu1 }
 0x1cb   : > { %v1169_v45 = vadd.f32 %v1146_v43, %v1090_v40  ;;  %v1170_v46 = vadd.f32 %v1166_v44, %v1091_v41 }
 0x1cd   : > { %v1177_v47 = vadd.f32 %v1175_v42, %v1169_v45  ;;  %v1178_v48 = vadd.f32 %v1175_v42, %v1170_v46 }
 0x1cf   : > { %v1179_v49 = vmax.f32 %v1177_v47, 0.0  ;;  %v1180_v50 = vmax.f32 %v1178_v48, 0.0 }
 0x1d1   : > { %1188 = vrot.lane.b32.xlu2 %v1180_v50, %s2880_s23  ;;  %1186 = vrot.lane.b32.xlu1 %v1179_v49, %s2880_s23  ;;  %s3627_s23 = smov 110  }
 0x1d9   : > { %1328 = vrot.lane.b32.xlu2 %v3003_v10, %s2883_s27  ;;  %1326 = vrot.lane.b32.xlu1 %v3001_v9, %s2883_s27 }
 0x1e1   : > { %1411 = vrot.lane.b32.xlu1 %v2999_v8, %s2881_s24 }
 0x1e9   : > { %1644 = vrot.lane.b32.xlu1 %v2997_v7, %s2882_s26 }
 0x1f1   : > { %1563 = vrot.lane.b32.xlu1 %v3003_v10, %s2884_s28 }
 0x1f9   : > { %1796 = vrot.lane.b32.xlu1 %v3001_v9, %s2885_s30 }
 0x22b   : > { %v1189_v51 = vpop.permute.xlu2 %1188 }
 0x22c   : > { %1197 = vst.msk [vmem:[#allocation3 + $0x10] sm:$0xff] %vm482_vm2, %v1189_v51 }
 0x233   : > { %v3158_v52 = vld [vmem:[#allocation3 + $0x10] sm:$0xff]  ;;  %v1329_v53 = vpop.permute.xlu2 %1328 }
 0x234   : > { %1215 = vrot.lane.b32.xlu0 %v3158_v52, %s2886_s14  ;;  %1499 = vrot.lane.b32.xlu1 %v3158_v52, %s3623_s17  ;;  %v1336_v54 = vmul.f32 %v1329_v53, %v3158_v52 }
 0x23c   : > { %1561 = vrot.lane.b32.xlu0 %v3001_v9, %s2884_s28 }
 0x243   : > { %v1187_v55 = vpop.permute.xlu1 %1186 }
 0x244   : > { %v3168_v56 = vsel %vm482_vm2, %v1187_v55, %v1189_v51  ;;  %1195 = vst.msk [vmem:[#allocation3] sm:$0xff] %vm1194_vm12, %v1187_v55  ;;  %1347 = vrot.lane.b32.xlu0 %v1336_v54, %s3625_s15  ;;  %vm1221_vm2 = vcmask 64512   ;;  %v2622_v51 = vld [vmem:[%s3606_s3 + $0x28] sm:$0xff] }
 0x245   : > { %v1201_v57 = vmul.f32 %v3168_v56, %v2999_v8 }
 0x247   : > { %1318 = vmatpush.msrb.mxu1 %v1201_v57  ;;  %v1879_v57 = vld [vmem:[%s3607_s4] sm:$0xff] }
 0x248   : > { %2619 = vmatmul.msk.f32.vlgmr.msrb.gmra.mxu1 %vm1221_vm2, %v1202_v22 }
 0x24b   : > { %v3173_v58 = vld [vmem:[#allocation3] sm:$0xff]  ;;  %v1327_v59 = vpop.permute.xlu1 %1326 }
 0x24c   : > { %v1200_v9 = vmul.f32 %v3173_v58, %v2997_v7  ;;  %v3179_v60 = vpack.i.bf16 %v3168_v56, %v3173_v58  ;;  %v1330_v63 = vsel %vm641_vm7, %v1327_v59, %v1329_v53  ;;  %v1334_v7 = vmul.f32 %v1327_v59, %v3173_v58 }
 0x24d   : > { %v1335_v1 = vmul.f32 %v1330_v63, %v3168_v56  ;;  %v1417_v6 = vmul.f32 %v1410_v3, %v3173_v58  ;;  %vm1975_vm7 = vcmask 72704  }
 0x24e   : > { %1295 = vmatpush.msrb.mxu0 %v1200_v9  ;;  %2759 = vrot.lane.b32.xlu0 %v3179_v60, %s3623_s17  ;;  %1977 = vst.msk [vmem:[#allocation4 + $0x8] sm:$0xff] %vm1975_vm7, %v2879_v0 }
 0x24f   : > { %2749 = vrot.lane.b32.xlu2 %v3179_v60, %s2886_s14  ;;  %v2753_v2 = vpack.i.bf16 %v1335_v1, %v1334_v7  ;;  %2617 = vmatmul.msk.f32.vlgmr.msrb.gmra.mxu0 %vm1221_vm2, %v1202_v22  ;;  %v2634_v7 = vld [vmem:[%s3606_s3 + $0x48] sm:$0xff]  ;;  %v2628_v1 = vld [vmem:[%s3606_s3 + $0x38] sm:$0xff]  ;;  %1976 = vst.msk [vmem:[#allocation4] sm:$0xff] %vm1975_vm7, %v2879_v0 }
 0x250   : > { %2620 = vmatmul.msk.f32.gmra.mxu1 %vm1221_vm2, %v1203_v32 }
 0x253   : > { %v1412_v61 = vpop.permute.xlu1 %1411 }
 0x254   : > { %v1419_v62 = vmul.f32 %v1412_v61, %v3158_v52  ;;  %v1413_v4 = vsel %vm720_vm8, %v1410_v3, %v1412_v61  ;;  %v2633_v61 = vld [vmem:[%s3606_s3 + $0x40] sm:$0xff] }
 0x255   : > { %v1418_v5 = vmul.f32 %v1413_v4, %v3168_v56 }
 0x256   : > { %1430 = vrot.lane.b32.xlu0 %v1419_v62, %s3624_s16 }
 0x257   : > { %1646 = vrot.lane.b32.xlu2 %v2999_v8, %s2882_s26  ;;  %v2763_v8 = vpack.i.bf16 %v1418_v5, %v1417_v6  ;;  %2618 = vmatmul.msk.f32.gmra.mxu0 %vm1221_vm2, %v1203_v32  ;;  %s3628_s26 = smov 95   ;;  %v2639_v6 = vld [vmem:[%s3606_s3 + $0x50] sm:$0xff] }
 0x25b   : > { %v1645_v11 = vpop.permute.xlu1 %1644 }
 0x25c   : > { %v1652_v28 = vmul.f32 %v1645_v11, %v3173_v58 }
 0x25f   : > { %2754 = vrot.lane.b32.xlu2 %v2753_v2, %s3625_s15 }
 0x263   : > { %v1564_v19 = vpop.permute.xlu1 %1563 }
 0x264   : > { %v1571_v41 = vmul.f32 %v1564_v19, %v3158_v52 }
 0x267   : > { %1798 = vrot.lane.b32.xlu2 %v3003_v10, %s2885_s30  ;;  %s2900_s30 = smov 120  }
 0x26b   : > { %v1797_v37 = vpop.permute.xlu1 %1796 }
 0x26c   : > { %v1804_v48 = vmul.f32 %v1797_v37, %v3173_v58 }
 0x26f   : > { %2764 = vrot.lane.b32.xlu2 %v2763_v8, %s3624_s16 }
 0x2a6   : > { %v1216_v12 = vpop.permute.xlu0 %1215  ;;  %v1500_v49 = vpop.permute.xlu1 %1499 }
 0x2a9   : > { %v2750_v13 = vpop.permute.xlu2 %2749 }
 0x2aa   : > { %v2752_v14 = vunpack.i.h.bf16 %v2750_v13  ;;  %v2751_v15 = vunpack.i.l.bf16 %v2750_v13 }
 0x2ac   : > { %v1217_v17 = vsel %vm524_vm13, %v2751_v15, %v2752_v14  ;;  %v1218_v10 = vsel %vm524_vm13, %v2752_v14, %v1216_v12  ;;  %vm2450_vm13 = vcmask 7168  }
 0x2ad   : > { %1243 = vmatpush.msra.mxu2 %v1217_v17  ;;  %1266 = vmatpush.msra.mxu3 %v1218_v10 }
 0x2ae   : > { %v1562_v20 = vpop.permute.xlu0 %1561  ;;  %2613 = vmatmul.msk.f32.vlgmr.msra.gmra.mxu2 %vm1221_vm2, %v2611_v16  ;;  %2615 = vmatmul.msk.f32.vlgmr.msra.gmra.mxu3 %vm1221_vm2, %v2611_v16  ;;  %v2645_v16 = vld [vmem:[%s3606_s3 + $0x60] sm:$0xff] }
 0x2af   : > { %v1565_v21 = vsel %vm869_vm9, %v1562_v20, %v1564_v19  ;;  %v1569_v18 = vmul.f32 %v1562_v20, %v3173_v58  ;;  %v1880_v19 = vld [vmem:[%s3607_s4 + $0x8] sm:$0xff]  ;;  %vm1978_vm9 = vcmask 671304  }
 0x2b0   : > { %v1570_v23 = vmul.f32 %v1565_v21, %v3168_v56  ;;  %v2640_v21 = vld [vmem:[%s3606_s3 + $0x58] sm:$0xff]  ;;  %1980 = vst.msk [vmem:[#allocation4 + $0x8] sm:$0xff] %vm1978_vm9, %v2879_v0 }
 0x2b1   : > { %v1647_v24 = vpop.permute.xlu2 %1646  ;;  %1979 = vst.msk [vmem:[#allocation4] sm:$0xff] %vm1978_vm9, %v2879_v0 }
 0x2b2   : > { %v2773_v25 = vpack.i.bf16 %v1570_v23, %v1569_v18  ;;  %v1648_v26 = vsel %vm948_vm10, %v1645_v11, %v1647_v24  ;;  %v1654_v27 = vmul.f32 %v1647_v24, %v3158_v52  ;;  %v2646_v23 = vld [vmem:[%s3606_s3 + $0x68] sm:$0xff]  ;;  %vm1989_vm10 = vcmask 597064  }
 0x2b3   : > { %v1653_v29 = vmul.f32 %v1648_v26, %v3168_v56 }
 0x2b4   : > { %1665 = vrot.lane.b32.xlu2 %v1654_v27, %s3626_s22  ;;  %2774 = vrot.lane.b32.xlu0 %v2773_v25, %s3627_s23 }
 0x2b5   : > { %v2768_v31 = vpack.i.bf16 %v1653_v29, %v1652_v28 }
 0x2b6   : > { %2614 = vmatmul.msk.f32.gmra.mxu2 %vm1221_vm2, %v2612_v30  ;;  %2616 = vmatmul.msk.f32.gmra.mxu3 %vm1221_vm2, %v2612_v30  ;;  %v1348_v33 = vpop.permute.xlu0 %1347  ;;  %v2651_v30 = vld [vmem:[%s3606_s3 + $0x70] sm:$0xff] }
 0x2b7   : > { %2769 = vrot.lane.b32.xlu1 %v2768_v31, %s3626_s22  ;;  %v2657_v31 = vld [vmem:[%s3606_s3 + $0x80] sm:$0xff]  ;;  %s2897_s22 = smov 8  }
 0x2b9   : > { %v2755_v34 = vpop.permute.xlu2 %2754 }
 0x2ba   : > { %v2757_v35 = vunpack.i.h.bf16 %v2755_v34  ;;  %v2756_v36 = vunpack.i.l.bf16 %v2755_v34  ;;  %v2652_v34 = vld [vmem:[%s3606_s3 + $0x78] sm:$0xff] }
 0x2bc   : > { %v1349_v39 = vsel %vm663_vm14, %v2756_v36, %v2757_v35  ;;  %v1350_v40 = vsel %vm663_vm14, %v2757_v35, %v1348_v33  ;;  %v2658_v35 = vld [vmem:[%s3606_s3 + $0x88] sm:$0xff]  ;;  %v1910_v36 = vld [vmem:[%s3614_s11 + $0x78] sm:$0xff] }
 0x2bd   : > { %1374 = vmatpush.msrb.mxu2 %v1349_v39  ;;  %1397 = vmatpush.msrb.mxu3 %v1350_v40 }
 0x2be   : > { %2623 = vmatmul.msk.f32.vlgmr.msrb.gmra.mxu2 %vm1221_vm2, %v2621_v38  ;;  %2625 = vmatmul.msk.f32.vlgmr.msrb.gmra.mxu3 %vm1221_vm2, %v2621_v38 }
 0x2bf   : > { %1582 = vrot.lane.b32.xlu1 %v1571_v41, %s3627_s23 }
 0x2c0   : > { %v2760_v42 = vpop.permute.xlu0 %2759 }
 0x2c1   : > { %v1799_v43 = vpop.permute.xlu2 %1798  ;;  %v2762_v44 = vunpack.i.h.bf16 %v2760_v42  ;;  %v2761_v45 = vunpack.i.l.bf16 %v2760_v42  ;;  %v1909_v42 = vld [vmem:[%s3614_s11 + $0x70] sm:$0xff] }
 0x2c2   : > { %v1800_v46 = vsel %vm1097_vm11, %v1797_v37, %v1799_v43  ;;  %v1806_v47 = vmul.f32 %v1799_v43, %v3158_v52  ;;  %v1926_v43 = vld [vmem:[%s3614_s11 + $0xf8] sm:$0xff]  ;;  %vm2404_vm11 = vcmask 523264  }
 0x2c3   : > { %v1805_v50 = vmul.f32 %v1800_v46, %v3168_v56  ;;  %v1501_v53 = vsel %vm812_vm0, %v2761_v45, %v2762_v44  ;;  %v1502_v54 = vsel %vm812_vm0, %v2762_v44, %v1500_v49  ;;  %v1908_v44 = vld [vmem:[%s3614_s11 + $0x68] sm:$0xff]  ;;  %v1925_v46 = vld [vmem:[%s3614_s11 + $0xf0] sm:$0xff] }
 0x2c4   : > { %1817 = vrot.lane.b32.xlu0 %v1806_v47, %s2893_s21  ;;  %1526 = vmatpush.msra.mxu2 %v1501_v53  ;;  %v1924_v49 = vld [vmem:[%s3614_s11 + $0xe8] sm:$0xff]  ;;  %v1906_v53 = vld [vmem:[%s3614_s11 + $0x58] sm:$0xff] }
 0x2c5   : > { %1549 = vmatpush.msra.mxu3 %v1502_v54  ;;  %v2783_v55 = vpack.i.bf16 %v1805_v50, %v1804_v48  ;;  %v3355_v45 = vpop.f32.mrf.mxu1  ;;  %v1907_v48 = vld [vmem:[%s3614_s11 + $0x60] sm:$0xff] }
 0x2c6   : > { %2624 = vmatmul.msk.f32.gmra.mxu2 %vm1221_vm2, %v2622_v51  ;;  %2626 = vmatmul.msk.f32.gmra.mxu3 %vm1221_vm2, %v2622_v51  ;;  %v1923_v54 = vld [vmem:[%s3614_s11 + $0xe0] sm:$0xff] }
 0x2c7   : > { %2779 = vrot.lane.b32.xlu1 %v3179_v60, %s3628_s26  ;;  %2784 = vrot.lane.b32.xlu2 %v2783_v55, %s2893_s21  ;;  %v2627_v60 = vld [vmem:[%s3606_s3 + $0x30] sm:$0xff]  ;;  %s2899_s21 = smov 118  }
 0x2c8   : > { %v1431_v9 = vpop.permute.xlu0 %1430  ;;  %v1905_v55 = vld [vmem:[%s3614_s11 + $0x50] sm:$0xff] }
 0x2c9   : > { %v2765_v56 = vpop.permute.xlu2 %2764 }
 0x2ca   : > { %v2767_v58 = vunpack.i.h.bf16 %v2765_v56  ;;  %v2766_v59 = vunpack.i.l.bf16 %v2765_v56  ;;  %v1922_v56 = vld [vmem:[%s3614_s11 + $0xd8] sm:$0xff] }
 0x2cc   : > { %1883 = vperm.xlu0 %2747, %v1879_v57   ;;  %v1432_v62 = vsel %vm742_vm15, %v2766_v59, %v2767_v58  ;;  %v1433_v63 = vsel %vm742_vm15, %v2767_v58, %v1431_v9  ;;  %v3344_v41 = vpop.f32.mrf.mxu0  ;;  %v1904_v58 = vld [vmem:[%s3614_s11 + $0x48] sm:$0xff]  ;;  %v1921_v59 = vld [vmem:[%s3614_s11 + $0xd0] sm:$0xff]  ;;  %v1903_v9 = vld [vmem:[%s3614_s11 + $0x40] sm:$0xff] }
 0x2cd   : > { %1457 = vmatpush.msra.mxu0 %v1432_v62  ;;  %1480 = vmatpush.msra.mxu1 %v1433_v63  ;;  %v3384_v57 = vpop.f32.mrf.mxu1  ;;  %v1920_v62 = vld [vmem:[%s3614_s11 + $0xc8] sm:$0xff] }
 0x2ce   : > { %2635 = vmatmul.msk.f32.vlgmr.msra.gmra.mxu2 %vm1221_vm2, %v2633_v61  ;;  %2637 = vmatmul.msk.f32.vlgmr.msra.gmra.mxu3 %vm1221_vm2, %v2633_v61 }
 0x2cf   : > { %1734 = vrot.lane.b32.xlu2 %v3158_v52, %s3628_s26  ;;  %2629 = vmatmul.msk.f32.vlgmr.msra.gmra.mxu0 %vm1221_vm2, %v2627_v60  ;;  %s3631_s26 = smov 111  }
 0x2d0   : > { %2631 = vmatmul.msk.f32.vlgmr.msra.gmra.mxu1 %vm1221_vm2, %v2627_v60  ;;  %1888 = vperm.xlu1 %2788, %v1880_v19   ;;  %v1902_v60 = vld [vmem:[%s3614_s11 + $0x38] sm:$0xff]  ;;  %v1913_v19 = vld [vmem:[%s3614_s11 + $0x90] sm:$0xff] }
 0x2d4   : > { %v3370_v51 = vpop.f32.mrf.mxu0 }
 0x2d6   : > { %2636 = vmatmul.msk.f32.gmra.mxu2 %vm1221_vm2, %v2634_v7  ;;  %2638 = vmatmul.msk.f32.gmra.mxu3 %vm1221_vm2, %v2634_v7  ;;  %v1919_v7 = vld [vmem:[%s3614_s11 + $0xc0] sm:$0xff] }
 0x2d7   : > { %2630 = vmatmul.msk.f32.gmra.mxu0 %vm1221_vm2, %v2628_v1 }
 0x2d8   : > { %2632 = vmatmul.msk.f32.gmra.mxu1 %vm1221_vm2, %v2628_v1 }
 0x30e   : > { %v1666_v52 = vpop.permute.xlu2 %1665 }
 0x321   : > { %v2785_v3 = vpop.permute.xlu2 %2784 }
 0x322   : > { %v2787_v12 = vunpack.i.h.bf16 %v2785_v3  ;;  %v2786_v13 = vunpack.i.l.bf16 %v2785_v3  ;;  %v1900_v3 = vld [vmem:[%s3614_s11 + $0x28] sm:$0xff] }
 0x324   : > { %v1819_v20 = vsel %vm1119_vm6, %v2786_v13, %v2787_v12 }
 0x326   : > { %v2775_v2 = vpop.permute.xlu0 %2774 }
 0x327   : > { %v2777_v4 = vunpack.i.h.bf16 %v2775_v2  ;;  %v2776_v5 = vunpack.i.l.bf16 %v2775_v2  ;;  %v1918_v2 = vld [vmem:[%s3614_s11 + $0xb8] sm:$0xff] }
 0x329   : > { %v2770_v8 = vpop.permute.xlu1 %2769  ;;  %v1584_v11 = vsel %vm891_vm1, %v2776_v5, %v2777_v4  ;;  %v1735_v29 = vpop.permute.xlu2 %1734  ;;  %v1899_v5 = vld [vmem:[%s3614_s11 + $0x20] sm:$0xff] }
 0x32a   : > { %v2772_v14 = vunpack.i.h.bf16 %v2770_v8  ;;  %v2771_v15 = vunpack.i.l.bf16 %v2770_v8  ;;  %1609 = vmatpush.msrb.mxu0 %v1584_v11  ;;  %v1898_v11 = vld [vmem:[%s3614_s11 + $0x18] sm:$0xff] }
 0x32b   : > { %2641 = vmatmul.msk.f32.vlgmr.msrb.gmra.mxu0 %vm1221_vm2, %v2639_v6 }
 0x32c   : > { %v1667_v17 = vsel %vm970_vm4, %v2771_v15, %v2772_v14  ;;  %v1668_v10 = vsel %vm970_vm4, %v2772_v14, %v1666_v52  ;;  %v1901_v52 = vld [vmem:[%s3614_s11 + $0x30] sm:$0xff] }
 0x32d   : > { %1692 = vmatpush.msrb.mxu2 %v1667_v17  ;;  %1715 = vmatpush.msrb.mxu3 %v1668_v10  ;;  %v1914_v17 = vld [vmem:[%s3614_s11 + $0x98] sm:$0xff]  ;;  %v1896_v10 = vld [vmem:[%s3614_s11 + $0x8] sm:$0xff] }
 0x32e   : > { %2647 = vmatmul.msk.f32.vlgmr.msrb.gmra.mxu2 %vm1221_vm2, %v2645_v16  ;;  %2649 = vmatmul.msk.f32.vlgmr.msrb.gmra.mxu3 %vm1221_vm2, %v2645_v16  ;;  %v1897_v16 = vld [vmem:[%s3614_s11 + $0x10] sm:$0xff] }
 0x32f   : > { %1844 = vmatpush.msra.mxu2 %v1819_v20  ;;  %v1895_v20 = vld [vmem:[%s3614_s11] sm:$0xff] }
 0x331   : > { %v1583_v18 = vpop.permute.xlu1 %1582  ;;  %v3336_v37 = vpop.f32.mrf.mxu2 }
 0x332   : > { %v1585_v22 = vsel %vm891_vm1, %v2777_v4, %v1583_v18  ;;  %v3338_v38 = vpop.f32.mrf.mxu3  ;;  %v1917_v4 = vld [vmem:[%s3614_s11 + $0xb0] sm:$0xff]  ;;  %v1911_v18 = vld [vmem:[%s3614_s11 + $0x80] sm:$0xff] }
 0x333   : > { %2642 = vmatmul.msk.f32.gmra.mxu0 %vm1221_vm2, %v2640_v21  ;;  %1632 = vmatpush.msrb.mxu1 %v1585_v22 }
 0x334   : > { %2643 = vmatmul.msk.f32.vlgmr.msrb.gmra.mxu1 %vm1221_vm2, %v2639_v6  ;;  %v1916_v6 = vld [vmem:[%s3614_s11 + $0xa8] sm:$0xff] }
 0x336   : > { %v1818_v24 = vpop.permute.xlu0 %1817  ;;  %2648 = vmatmul.msk.f32.gmra.mxu2 %vm1221_vm2, %v2646_v23  ;;  %2650 = vmatmul.msk.f32.gmra.mxu3 %vm1221_vm2, %v2646_v23 }
 0x337   : > { %v1820_v25 = vsel %vm1119_vm6, %v2787_v12, %v1818_v24  ;;  %v1915_v12 = vld [vmem:[%s3614_s11 + $0xa0] sm:$0xff] }
 0x338   : > { %1867 = vmatpush.msra.mxu3 %v1820_v25 }
 0x339   : > { %v2780_v26 = vpop.permute.xlu1 %2779  ;;  %v3340_v39 = vpop.f32.mrf.mxu2 }
 0x33a   : > { %v2782_v27 = vunpack.i.h.bf16 %v2780_v26  ;;  %v2781_v28 = vunpack.i.l.bf16 %v2780_v26  ;;  %v3342_v40 = vpop.f32.mrf.mxu3  ;;  %v1298_v26 = vadd.f32 %v3344_v41, %v3336_v37 }
 0x33b   : > { %v1324_v37 = vadd.f32 %v3384_v57, %v3342_v40 }
 0x33c   : > { %2644 = vmatmul.msk.f32.gmra.mxu1 %vm1221_vm2, %v2640_v21  ;;  %v1736_v32 = vsel %vm1040_vm5, %v2781_v28, %v2782_v27  ;;  %v1737_v33 = vsel %vm1040_vm5, %v2782_v27, %v1735_v29  ;;  %v1912_v21 = vld [vmem:[%s3614_s11 + $0x88] sm:$0xff]  ;;  %v1321_v27 = vadd.f32 %v3355_v45, %v3338_v38  ;;  %v3460_v28 = vld [vmem:[%s3613_s10] sm:$0x3] }
 0x33d   : > { %1761 = vmatpush.msra.mxu0 %v1736_v32  ;;  %1784 = vmatpush.msra.mxu1 %v1737_v33 }
 0x33e   : > { %2653 = vmatmul.msk.f32.vlgmr.msra.gmra.mxu0 %vm1221_vm2, %v2651_v30  ;;  %2659 = vmatmul.msk.f32.vlgmr.msra.gmra.mxu2 %vm1221_vm2, %v2657_v31 }
 0x33f   : > { %2661 = vmatmul.msk.f32.vlgmr.msra.gmra.mxu3 %vm1221_vm2, %v2657_v31  ;;  %1927 = vmatpush.msrb.mxu0 %v1910_v36  ;;  %v3463_v31 = vperm.slane %v3460_v28, 1  ;;  %v1301_v36 = vadd.f32 %v3370_v51, %v3340_v39 }
 0x340   : > { %1950 = vmatpush.msrb.mxu1 %v1926_v43 }
 0x341   : > { %1928 = vmatpush.msrb.mxu0 %v1909_v42  ;;  %v3360_v47 = vpop.f32.mrf.mxu2  ;;  %2070 = vrot.lane.b32.xlu1 %v3463_v31, %s2883_s27  ;;  %s2896_s27 = smov 9  }
 0x342   : > { %v3368_v50 = vpop.f32.mrf.mxu3  ;;  %1951 = vmatpush.msrb.mxu1 %v1925_v46  ;;  %v1405_v32 = vadd.f32 %v3360_v47, %v1298_v26 }
 0x343   : > { %1929 = vmatpush.msrb.mxu0 %v1908_v44  ;;  %v1406_v33 = vadd.f32 %v3368_v50, %v1321_v27 }
 0x344   : > { %2655 = vmatmul.msk.f32.vlgmr.msra.gmra.mxu1 %vm1221_vm2, %v2651_v30 }
 0x345   : > { %1930 = vmatpush.msrb.mxu0 %v1907_v48  ;;  %1952 = vmatpush.msrb.mxu1 %v1924_v49 }
 0x346   : > { %2654 = vmatmul.msk.f32.gmra.mxu0 %vm1221_vm2, %v2652_v34  ;;  %2660 = vmatmul.msk.f32.gmra.mxu2 %vm1221_vm2, %v2658_v35 }
 0x347   : > { %2662 = vmatmul.msk.f32.gmra.mxu3 %vm1221_vm2, %v2658_v35  ;;  %1931 = vmatpush.msrb.mxu0 %v1906_v53 }
 0x348   : > { %1953 = vmatpush.msrb.mxu1 %v1923_v54 }
 0x349   : > { %1932 = vmatpush.msrb.mxu0 %v1905_v55  ;;  %v3395_v61 = vpop.f32.mrf.mxu2  ;;  %2205 = vrot.lane.b32.xlu1 %v3463_v31, %s2895_s20 }
 0x34a   : > { %1954 = vmatpush.msrb.mxu1 %v1922_v56  ;;  %v3400_v63 = vpop.f32.mrf.mxu3  ;;  %v1407_v44 = vadd.f32 %v3395_v61, %v1301_v36 }
 0x34b   : > { %1933 = vmatpush.msrb.mxu0 %v1904_v58  ;;  %v1408_v45 = vadd.f32 %v3400_v63, %v1324_v37  ;;  %v1884_v63 = vpop.permute.xlu0 %1883 }
 0x34c   : > { %2656 = vmatmul.msk.f32.gmra.mxu1 %vm1221_vm2, %v2652_v34  ;;  %v1459_v1 = vpop.f32.mrf.mxu0 }
 0x34d   : > { %1955 = vmatpush.msrb.mxu1 %v1921_v59  ;;  %1934 = vmatpush.msrb.mxu0 %v1903_v9  ;;  %v1482_v8 = vpop.f32.mrf.mxu1  ;;  %v1488_v38 = vadd.f32 %v1459_v1, %v1405_v32 }
 0x34e   : > { %v1489_v41 = vadd.f32 %v1482_v8, %v1406_v33  ;;  %v1889_v8 = vpop.permute.xlu1 %1888 }
 0x34f   : > { %1956 = vmatpush.msrb.mxu1 %v1920_v62  ;;  %1935 = vmatpush.msrb.mxu0 %v1902_v60 }
 0x351   : > { %1957 = vmatpush.msrb.mxu1 %v1919_v7  ;;  %1936 = vmatpush.msrb.mxu0 %v1901_v52  ;;  %v1528_v13 = vpop.f32.mrf.mxu2 }
 0x352   : > { %v1551_v14 = vpop.f32.mrf.mxu3  ;;  %v1557_v46 = vadd.f32 %v1528_v13, %v1488_v38 }
 0x353   : > { %1958 = vmatpush.msrb.mxu1 %v1918_v2  ;;  %1937 = vmatpush.msrb.mxu0 %v1900_v3  ;;  %v1558_v47 = vadd.f32 %v1551_v14, %v1489_v41 }
 0x354   : > { %v1462_v15 = vpop.f32.mrf.mxu0 }
 0x355   : > { %1959 = vmatpush.msrb.mxu1 %v1917_v4  ;;  %1938 = vmatpush.msrb.mxu0 %v1899_v5  ;;  %v1485_v22 = vpop.f32.mrf.mxu1  ;;  %v1490_v51 = vadd.f32 %v1462_v15, %v1407_v44 }
 0x356   : > { %v1491_v53 = vadd.f32 %v1485_v22, %v1408_v45 }
 0x357   : > { %1960 = vmatpush.msrb.mxu1 %v1916_v6  ;;  %1939 = vmatpush.msrb.mxu0 %v1898_v11 }
 0x359   : > { %1961 = vmatpush.msrb.mxu1 %v1915_v12  ;;  %1940 = vmatpush.msrb.mxu0 %v1897_v16  ;;  %v1531_v23 = vpop.f32.mrf.mxu2 }
 0x35a   : > { %v1554_v25 = vpop.f32.mrf.mxu3  ;;  %v1559_v58 = vadd.f32 %v1531_v23, %v1490_v51 }
 0x35b   : > { %1962 = vmatpush.msrb.mxu1 %v1914_v17  ;;  %1941 = vmatpush.msrb.mxu0 %v1896_v10  ;;  %v1560_v59 = vadd.f32 %v1554_v25, %v1491_v53 }
 0x35d   : > { %1963 = vmatpush.msrb.mxu1 %v1913_v19  ;;  %1942 = vmatpush.msrb.mxu0 %v1895_v20 }
 0x35f   : > { %1964 = vmatpush.msrb.mxu1 %v1912_v21 }
 0x361   : > { %1965 = vmatpush.msrb.mxu1 %v1911_v18 }
 0x3a8   : > { %v1611_v24 = vpop.f32.mrf.mxu0 }
 0x3a9   : > { %v1640_v50 = vadd.f32 %v1611_v24, %v1557_v46  ;;  %v1994_v24 = vperm.slane %v3460_v28, 0 }
 0x3b0   : > { %v1614_v35 = vpop.f32.mrf.mxu0 }
 0x3b1   : > { %v1634_v29 = vpop.f32.mrf.mxu1  ;;  %v1694_v30 = vpop.f32.mrf.mxu2  ;;  %v1642_v60 = vadd.f32 %v1614_v35, %v1559_v58 }
 0x3b2   : > { %v1717_v34 = vpop.f32.mrf.mxu3  ;;  %v1641_v39 = vadd.f32 %v1634_v29, %v1558_v47  ;;  %v1723_v40 = vadd.f32 %v1694_v30, %v1640_v50 }
 0x3b3   : > { %v2071_v30 = vpop.permute.xlu1 %2070 }
 0x3b4   : > { %v1724_v54 = vadd.f32 %v1717_v34, %v1641_v39 }
 0x3b9   : > { %v1637_v42 = vpop.f32.mrf.mxu1  ;;  %v1697_v43 = vpop.f32.mrf.mxu2 }
 0x3ba   : > { %v1720_v48 = vpop.f32.mrf.mxu3  ;;  %v1643_v7 = vadd.f32 %v1637_v42, %v1560_v59  ;;  %v1725_v3 = vadd.f32 %v1697_v43, %v1642_v60  ;;  %v2664_v60 = vld [vmem:[%s3608_s5 + $0x18] sm:$0xff] }
 0x3bb   : > { %v1763_v49 = vpop.f32.mrf.mxu0 }
 0x3bc   : > { %v1792_v55 = vadd.f32 %v1763_v49, %v1723_v40  ;;  %v1726_v5 = vadd.f32 %v1720_v48, %v1643_v7  ;;  %v2386_v40 = vld [vmem:[%s3609_s6] sm:$0xff]  ;;  %v2673_v7 = vld [vmem:[%s3608_s5 + $0x30] sm:$0xff] }
 0x3c1   : > { %v1786_v56 = vpop.f32.mrf.mxu1  ;;  %v1846_v57 = vpop.f32.mrf.mxu2 }
 0x3c2   : > { %v1793_v9 = vadd.f32 %v1786_v56, %v1724_v54  ;;  %v1875_v61 = vadd.f32 %v1846_v57, %v1792_v55  ;;  %v1869_v62 = vpop.f32.mrf.mxu3  ;;  %v1997_v55 = vld [vmem:[%s3608_s5] sm:$0xff]  ;;  %v1998_v56 = vld [vmem:[%s3608_s5 + $0x8] sm:$0xff] }
 0x3c3   : > { %v1766_v2 = vpop.f32.mrf.mxu0 }
 0x3c4   : > { %v1891_v1 = vadd.f32 %v1884_v63, %v1875_v61  ;;  %v1876_v52 = vadd.f32 %v1869_v62, %v1793_v9  ;;  %v1794_v6 = vadd.f32 %v1766_v2, %v1725_v3  ;;  %v2663_v9 = vld [vmem:[%s3608_s5 + $0x10] sm:$0xff]  ;;  %v2674_v3 = vld [vmem:[%s3608_s5 + $0x38] sm:$0xff] }
 0x3c6   : > { %v1892_v4 = vadd.f32 %v1884_v63, %v1876_v52  ;;  %1943 = vmatmul.f32.vlgmr.msrb.gmra.mxu0 %v1891_v1 }
 0x3c8   : > { %1966 = vmatmul.f32.vlgmr.msrb.gmra.mxu1 %v1892_v4 }
 0x3c9   : > { %v1789_v11 = vpop.f32.mrf.mxu1  ;;  %v1849_v12 = vpop.f32.mrf.mxu2 }
 0x3ca   : > { %v1795_v13 = vadd.f32 %v1789_v11, %v1726_v5  ;;  %v1877_v14 = vadd.f32 %v1849_v12, %v1794_v6  ;;  %v1872_v15 = vpop.f32.mrf.mxu3  ;;  %v2387_v6 = vld [vmem:[%s3609_s6 + $0x8] sm:$0xff]  ;;  %v2677_v12 = vld [vmem:[%s3608_s5 + $0x40] sm:$0xff] }
 0x3cc   : > { %v1878_v16 = vadd.f32 %v1872_v15, %v1795_v13  ;;  %v1893_v17 = vadd.f32 %v1889_v8, %v1877_v14  ;;  %v2689_v14 = vld [vmem:[%s3608_s5 + $0x70] sm:$0xff] }
 0x3ce   : > { %1946 = vmatmul.f32.gmra.mxu0 %v1893_v17  ;;  %v1894_v10 = vadd.f32 %v1889_v8, %v1878_v16  ;;  %v2669_v16 = vld [vmem:[%s3608_s5 + $0x20] sm:$0xff] }
 0x3d0   : > { %1969 = vmatmul.f32.gmra.mxu1 %v1894_v10 }
 0x443   : > { %v1944_v19 = vpop.f32.mrf.mxu0 }
 0x445   : > { %v1967_v20 = vpop.f32.mrf.mxu1 }
 0x446   : > { %v3480_v21 = vadd.f32 %v1967_v20, %v1944_v19 }
 0x448   : > { %v1973_v18 = vmax.f32 %v3480_v21, 0.0 }
 0x44a   : > { %1983 = vrot.lane.b32.xlu0 %v1973_v18, %s2896_s27 }
 0x44b   : > { %v1947_v22 = vpop.f32.mrf.mxu0 }
 0x44d   : > { %v1970_v23 = vpop.f32.mrf.mxu1 }
 0x44e   : > { %v3486_v25 = vadd.f32 %v1970_v23, %v1947_v22  ;;  %v2681_v22 = vld [vmem:[%s3608_s5 + $0x50] sm:$0xff] }
 0x450   : > { %v1974_v26 = vmax.f32 %v3486_v25, 0.0  ;;  %v2417_v25 = vld [vmem:[%s3611_s8] sm:$0xff] }
 0x452   : > { %2252 = vrot.lane.b32.xlu0 %v1994_v24, %s2881_s24  ;;  %1985 = vrot.lane.b32.xlu2 %v1974_v26, %s2896_s27  ;;  %s2898_s24 = smov 119  }
 0x45a   : > { %2339 = vrot.lane.b32.xlu0 %v3463_v31, %s2884_s28  ;;  %2118 = vrot.lane.b32.xlu2 %v1994_v24, %s2897_s22  ;;  %v2206_v31 = vpop.permute.xlu1 %2205  ;;  %s3629_s28 = smov 126  }
 0x4ac   : > { %v1986_v0 = vpop.permute.xlu2 %1985 }
 0x4ad   : > { %1991 = vst.msk [vmem:[#allocation4 + $0x8] sm:$0xff] %vm1989_vm10, %v1986_v0  ;;  %v2690_v0 = vld [vmem:[%s3608_s5 + $0x78] sm:$0xff] }
 0x4b4   : > { %v1993_v27 = vld [vmem:[#allocation4 + $0x8] sm:$0xff]  ;;  %v2119_v38 = vpop.permute.xlu2 %2118 }
 0x4b5   : > { %v1996_v29 = vmul.f32 %v1994_v24, %v1993_v27  ;;  %v2074_v36 = vmul.f32 %v2071_v30, %v1993_v27  ;;  %v2209_v44 = vmul.f32 %v2206_v31, %v1993_v27  ;;  %v2122_v45 = vmul.f32 %v2119_v38, %v1993_v27 }
 0x4b7   : > { %2059 = vmatpush.msrb.mxu3 %v1996_v29  ;;  %v2670_v29 = vld [vmem:[%s3608_s5 + $0x28] sm:$0xff] }
 0x4bc   : > { %v1984_v28 = vpop.permute.xlu0 %1983 }
 0x4bd   : > { %1990 = vst.msk [vmem:[#allocation4] sm:$0xff] %vm1989_vm10, %v1984_v28 }
 0x4c4   : > { %v1992_v32 = vld [vmem:[#allocation4] sm:$0xff]  ;;  %v2253_v37 = vpop.permute.xlu0 %2252 }
 0x4c5   : > { %v2804_v33 = vpack.i.bf16 %v1992_v32, %v1993_v27  ;;  %v1995_v34 = vmul.f32 %v1994_v24, %v1992_v32  ;;  %v2073_v35 = vmul.f32 %v2071_v30, %v1992_v32  ;;  %v2208_v42 = vmul.f32 %v2206_v31, %v1992_v32  ;;  %v2678_v24 = vld [vmem:[%s3608_s5 + $0x48] sm:$0xff]  ;;  %v2682_v30 = vld [vmem:[%s3608_s5 + $0x58] sm:$0xff] }
 0x4c6   : > { %v2121_v43 = vmul.f32 %v2119_v38, %v1992_v32  ;;  %v2255_v46 = vmul.f32 %v2253_v37, %v1992_v32  ;;  %v2256_v47 = vmul.f32 %v2253_v37, %v1993_v27  ;;  %v2694_v37 = vld [vmem:[%s3608_s5 + $0x88] sm:$0xff] }
 0x4c7   : > { %2805 = vrot.lane.b32.xlu0 %v2804_v33, %s2898_s24  ;;  %2790 = vrot.lane.b32.xlu2 %v2804_v33, %s2886_s14  ;;  %v2794_v41 = vpack.i.bf16 %v2073_v35, %v2074_v36  ;;  %v2819_v48 = vpack.i.bf16 %v2208_v42, %v2209_v44  ;;  %s3630_s14 = smov 112   ;;  %v2693_v35 = vld [vmem:[%s3608_s5 + $0x80] sm:$0xff]  ;;  %v2686_v36 = vld [vmem:[%s3608_s5 + $0x68] sm:$0xff] }
 0x4c8   : > { %2060 = vmatpush.msrb.mxu3 %v1995_v34  ;;  %v2799_v49 = vpack.i.bf16 %v2121_v43, %v2122_v45  ;;  %v2809_v50 = vpack.i.bf16 %v2255_v46, %v2256_v47  ;;  %v2685_v34 = vld [vmem:[%s3608_s5 + $0x60] sm:$0xff] }
 0x4c9   : > { %2795 = vrot.lane.b32.xlu1 %v2794_v41, %s3629_s28  ;;  %2667 = vmatmul.msk.f32.vlgmr.msrb.gmra.mxu3 %vm720_vm8, %v1997_v55  ;;  %s2702_s28 = sshll.u32 %s3633_s29, 4 }
 0x4ca   : > { %s465_s20 = scalar_lea.vmem %s3615_s12, %s2702_s28 }
 0x4cc   : > { %v2340_v39 = vpop.permute.xlu0 %2339 }
 0x4cd   : > { %v2342_v51 = vmul.f32 %v2340_v39, %v1992_v32  ;;  %v2343_v53 = vmul.f32 %v2340_v39, %v1993_v27 }
 0x4cf   : > { %2820 = vrot.lane.b32.xlu0 %v2819_v48, %s2899_s21  ;;  %2800 = vrot.lane.b32.xlu2 %v2799_v49, %s2900_s30  ;;  %v2824_v54 = vpack.i.bf16 %v2342_v51, %v2343_v53 }
 0x4d1   : > { %2810 = vrot.lane.b32.xlu1 %v2809_v50, %s3630_s14  ;;  %2668 = vmatmul.msk.f32.gmra.mxu3 %vm720_vm8, %v1998_v56  ;;  %s470_s14 = scalar_lea.vmem %s3616_s13, %s2702_s28 }
 0x4d7   : > { %2390 = vperm.xlu0 %2747, %v2386_v40   ;;  %2815 = vrot.lane.b32.xlu2 %v2804_v33, %s3631_s26 }
 0x4d9   : > { %2825 = vrot.lane.b32.xlu1 %v2824_v54, %s3627_s23 }
 0x4df   : > { %2395 = vperm.xlu2 %2829, %v2387_v6  }
 0x521   : > { %v2791_v57 = vpop.permute.xlu2 %2790 }
 0x522   : > { %v2792_v58 = vunpack.i.l.bf16 %v2791_v57  ;;  %v2793_v59 = vunpack.i.h.bf16 %v2791_v57 }
 0x524   : > { %2030 = vmatpush.msrb.mxu2 %v2792_v58 }
 0x526   : > { %2031 = vmatpush.msrb.mxu2 %v2793_v59 }
 0x527   : > { %2665 = vmatmul.msk.f32.vlgmr.msrb.gmra.mxu2 %vm720_vm8, %v2663_v9 }
 0x529   : > { %v2801_v61 = vpop.permute.xlu2 %2800 }
 0x52a   : > { %v2802_v62 = vunpack.i.l.bf16 %v2801_v61  ;;  %v2803_v63 = vunpack.i.h.bf16 %v2801_v61 }
 0x52c   : > { %2154 = vmatpush.msra.mxu3 %v2802_v62 }
 0x52e   : > { %2155 = vmatpush.msra.mxu3 %v2803_v63 }
 0x52f   : > { %2666 = vmatmul.msk.f32.gmra.mxu2 %vm720_vm8, %v2664_v60  ;;  %2675 = vmatmul.msk.f32.vlgmr.msra.gmra.mxu3 %vm720_vm8, %v2673_v7 }
 0x531   : > { %v2816_v1 = vpop.permute.xlu2 %2815 }
 0x532   : > { %v2817_v52 = vunpack.i.l.bf16 %v2816_v1  ;;  %v2818_v2 = vunpack.i.h.bf16 %v2816_v1 }
 0x534   : > { %2328 = vmatpush.msrb.mxu3 %v2817_v52 }
 0x536   : > { %2329 = vmatpush.msrb.mxu3 %v2818_v2 }
 0x537   : > { %2676 = vmatmul.msk.f32.gmra.mxu3 %vm720_vm8, %v2674_v3 }
 0x539   : > { %v2806_v4 = vpop.permute.xlu0 %2805 }
 0x53a   : > { %v2807_v5 = vunpack.i.l.bf16 %v2806_v4  ;;  %v2808_v8 = vunpack.i.h.bf16 %v2806_v4 }
 0x53b   : > { %v2796_v11 = vpop.permute.xlu1 %2795 }
 0x53c   : > { %2194 = vmatpush.msra.mxu0 %v2807_v5  ;;  %v2797_v13 = vunpack.i.l.bf16 %v2796_v11  ;;  %v2798_v15 = vunpack.i.h.bf16 %v2796_v11 }
 0x53e   : > { %2195 = vmatpush.msra.mxu0 %v2808_v8  ;;  %2106 = vmatpush.msra.mxu2 %v2797_v13 }
 0x53f   : > { %2679 = vmatmul.msk.f32.vlgmr.msra.gmra.mxu0 %vm720_vm8, %v2677_v12  ;;  %2691 = vmatmul.msk.f32.vlgmr.msrb.gmra.mxu3 %vm720_vm8, %v2689_v14  ;;  %v2396_v12 = vpop.permute.xlu2 %2395 }
 0x540   : > { %2107 = vmatpush.msra.mxu2 %v2798_v15 }
 0x541   : > { %v2821_v17 = vpop.permute.xlu0 %2820  ;;  %2671 = vmatmul.msk.f32.vlgmr.msra.gmra.mxu2 %vm720_vm8, %v2669_v16 }
 0x542   : > { %v2822_v10 = vunpack.i.l.bf16 %v2821_v17  ;;  %v2823_v19 = vunpack.i.h.bf16 %v2821_v17 }
 0x543   : > { %v2811_v20 = vpop.permute.xlu1 %2810 }
 0x544   : > { %2241 = vmatpush.msra.mxu1 %v2822_v10  ;;  %v2812_v23 = vunpack.i.l.bf16 %v2811_v20  ;;  %v2813_v27 = vunpack.i.h.bf16 %v2811_v20 }
 0x546   : > { %2242 = vmatpush.msra.mxu1 %v2823_v19  ;;  %2288 = vmatpush.msrb.mxu2 %v2812_v23  ;;  %v2416_v23 = vld [vmem:[#allocation5 + $0x8] sm:$0x3] }
 0x547   : > { %2683 = vmatmul.msk.f32.vlgmr.msra.gmra.mxu1 %vm720_vm8, %v2681_v22  ;;  %2680 = vmatmul.msk.f32.gmra.mxu0 %vm720_vm8, %v2678_v24  ;;  %v2415_v22 = vld [vmem:[#allocation5] sm:$0xff] }
 0x548   : > { %2692 = vmatmul.msk.f32.gmra.mxu3 %vm720_vm8, %v2690_v0  ;;  %2289 = vmatpush.msrb.mxu2 %v2813_v27  ;;  %v2418_v0 = vld [vmem:[%s3611_s8 + $0x8] sm:$0x3] }
 0x549   : > { %2672 = vmatmul.msk.f32.gmra.mxu2 %vm720_vm8, %v2670_v29  ;;  %v2391_v7 = vpop.permute.xlu0 %2390 }
 0x54b   : > { %v2826_v28 = vpop.permute.xlu1 %2825 }
 0x54c   : > { %v2827_v32 = vunpack.i.l.bf16 %v2826_v28  ;;  %v2828_v33 = vunpack.i.h.bf16 %v2826_v28  ;;  %v2062_v31 = vpop.f32.mrf.mxu3 }
 0x54e   : > { %2375 = vmatpush.msrb.mxu0 %v2827_v32 }
 0x54f   : > { %2684 = vmatmul.msk.f32.gmra.mxu1 %vm720_vm8, %v2682_v30 }
 0x550   : > { %2376 = vmatpush.msrb.mxu0 %v2828_v33 }
 0x551   : > { %2687 = vmatmul.msk.f32.vlgmr.msrb.gmra.mxu2 %vm720_vm8, %v2685_v34  ;;  %2695 = vmatmul.msk.f32.vlgmr.msrb.gmra.mxu0 %vm720_vm8, %v2693_v35 }
 0x554   : > { %v2065_v41 = vpop.f32.mrf.mxu3 }
 0x559   : > { %2688 = vmatmul.msk.f32.gmra.mxu2 %vm720_vm8, %v2686_v36  ;;  %2696 = vmatmul.msk.f32.gmra.mxu0 %vm720_vm8, %v2694_v37 }
 0x5aa   : > { %v2033_v38 = vpop.f32.mrf.mxu2 }
 0x5ab   : > { %v2063_v46 = vadd.f32 %v2062_v31, %v2033_v38 }
 0x5b2   : > { %v2036_v42 = vpop.f32.mrf.mxu2  ;;  %v2157_v43 = vpop.f32.mrf.mxu3 }
 0x5b3   : > { %v2066_v51 = vadd.f32 %v2065_v41, %v2036_v42 }
 0x5ba   : > { %v2160_v48 = vpop.f32.mrf.mxu3 }
 0x5bc   : > { %v2197_v44 = vpop.f32.mrf.mxu0 }
 0x5c2   : > { %v2331_v55 = vpop.f32.mrf.mxu3 }
 0x5c4   : > { %v2109_v45 = vpop.f32.mrf.mxu2  ;;  %v2200_v49 = vpop.f32.mrf.mxu0 }
 0x5c5   : > { %v2115_v47 = vadd.f32 %v2109_v45, %v2063_v46  ;;  %v2244_v53 = vpop.f32.mrf.mxu1 }
 0x5c7   : > { %v2163_v50 = vadd.f32 %v2157_v43, %v2115_v47 }
 0x5c9   : > { %v2203_v40 = vadd.f32 %v2197_v44, %v2163_v50 }
 0x5cb   : > { %v2250_v56 = vadd.f32 %v2244_v53, %v2203_v40  ;;  %v2334_v3 = vpop.f32.mrf.mxu3 }
 0x5cc   : > { %v2112_v39 = vpop.f32.mrf.mxu2 }
 0x5cd   : > { %v2116_v54 = vadd.f32 %v2112_v39, %v2066_v51  ;;  %v2247_v63 = vpop.f32.mrf.mxu1 }
 0x5ce   : > { %v2378_v59 = vpop.f32.mrf.mxu0 }
 0x5cf   : > { %v2164_v57 = vadd.f32 %v2160_v48, %v2116_v54 }
 0x5d1   : > { %v2204_v61 = vadd.f32 %v2200_v49, %v2164_v57 }
 0x5d3   : > { %v2251_v1 = vadd.f32 %v2247_v63, %v2204_v61 }
 0x5d4   : > { %v2291_v58 = vpop.f32.mrf.mxu2 }
 0x5d5   : > { %v2297_v9 = vadd.f32 %v2291_v58, %v2250_v56 }
 0x5d6   : > { %v2381_v6 = vpop.f32.mrf.mxu0 }
 0x5d7   : > { %v2337_v62 = vadd.f32 %v2331_v55, %v2297_v9 }
 0x5d9   : > { %v2384_v60 = vadd.f32 %v2378_v59, %v2337_v62 }
 0x5db   : > { %v2398_v52 = vadd.f32 %v2391_v7, %v2384_v60 }
 0x5dc   : > { %v2294_v2 = vpop.f32.mrf.mxu2 }
 0x5dd   : > { %v2298_v4 = vadd.f32 %v2294_v2, %v2251_v1  ;;  %v2400_v5 = vadd.f32 %v2398_v52, %v1973_v18 }
 0x5df   : > { %v2338_v8 = vadd.f32 %v2334_v3, %v2298_v4  ;;  %v2402_v11 = vmax.f32 %v2400_v5, 0.0 }
 0x5e1   : > { %v2385_v13 = vadd.f32 %v2381_v6, %v2338_v8  ;;  %v2407_v14 = vsel %vm2404_vm11, %v2402_v11, 0.0  ;;  %2405 = vst.msk [vmem:[%s470_s14] sm:$0xff] %vm2404_vm11, %v2402_v11 }
 0x5e2   : > { %2408 = vadd.xlane.f32.xlu2 %v2407_v14 }
 0x5e3   : > { %v2399_v15 = vadd.f32 %v2396_v12, %v2385_v13 }
 0x5e5   : > { %v2401_v16 = vadd.f32 %v2399_v15, %v1974_v26 }
 0x5e7   : > { %v2403_v21 = vmax.f32 %v2401_v16, 0.0 }
 0x5e9   : > { %v2410_v18 = vsel %vm2404_vm11, %v2403_v21, 0.0  ;;  %2406 = vst.msk [vmem:[%s470_s14 + $0x8] sm:$0xff] %vm2404_vm11, %v2403_v21 }
 0x5ea   : > { %2411 = vadd.xlane.f32.xlu1 %v2410_v18 }
 0x655   : > { %v2409_v17 = vpop.xlane.xlu2 %2408 }
 0x656   : > { %v2413_v20 = vmul.f32 0.015625, %v2409_v17 }
 0x65d   : > { %v2412_v10 = vpop.xlane.xlu1 %2411 }
 0x65e   : > { %v2414_v19 = vmul.f32 0.015625, %v2412_v10 }
 0x660   : > { %2439 = vmatpush.msrb.mxu1 %v2414_v19 }
 0x662   : > { %2440 = vmatpush.msrb.mxu1 %v2413_v20 }
 0x663   : > { %2697 = vmatmul.msk.f32.vlgmr.msrb.gmra.mxu1 %vm720_vm8, %v2415_v22 }
 0x66b   : > { %2698 = vmatmul.msk.f32.gmra.mxu1 %vm720_vm8, %v2416_v23  ;;  %vm2452_vm8 = vcmask 1024  }
 0x6e0   : > { %v2442_v26 = vpop.f32.mrf.mxu1 }
 0x6e1   : > { %v2443_v24 = vadd.f32 %v2442_v26, %v2417_v25 }
 0x6e3   : > { %2830 = vtanh.f32 %v2443_v24 }
 0x6e8   : > { %v2445_v27 = vpop.f32.mrf.mxu1 }
 0x6e9   : > { %v2831_v29 = vpop.eup %2830  ;;  %v2446_v28 = vadd.f32 %v2445_v27, %v2418_v0 }
 0x6ea   : > { %2451 = vst.msk [vmem:[%s465_s20] sm:$0xff] %vm2450_vm13, %v2831_v29 }
 0x6eb   : > { %2832 = vtanh.f32 %v2446_v28 }
 0x6f1   : > { %v2833_v30 = vpop.eup %2832 }
 0x6f2   : > { %2453 = vst.msk [vmem:[%s465_s20 + $0x8] sm:$0x3] %vm2452_vm8, %v2833_v30 }
 0x6f3 PF: > { %s25_s25 = sadd.s32 1, %s2874_s25  }
 0x6f4   : > { %p22_p7 = scmp.ge.s32.totalorder %s25_s25, 4  }
 0x6f6   :  { %24 = sbr.rel (!%p22_p7) target bundleno = 1 (0x1), region = 147 }
 0x6fb   :  { %2491 = vsyncpa [#allocation6], 1 }
 0x6fc   :  { %2493 = vsyncpa [#allocation6 + $0x1], 1 }

</bundles_post_ra>
